<compile_context>
chip_gen: v6e
topology: v6e:2x2x1
jax: 0.10.0
libtpu: 0.0.40
codegen_flags: <defaults>
</compile_context>

<pallas_src>
import functools

import jax
import jax.numpy as jnp
from jax import lax
from jax.experimental import pallas as pl
from jax.experimental.pallas import tpu as pltpu

DTYPE = jnp.bfloat16  # TODO(synk): torch.float16 mapped to bfloat16 (TPU-native half precision)
LN_EPS = 1e-5
NEG_INF = -1e30


def _layernorm_f32(x, w, b):
    mu = jnp.mean(x, axis=-1, keepdims=True)
    xc = x - mu
    var = jnp.mean(xc * xc, axis=-1, keepdims=True)
    return xc * lax.rsqrt(var + LN_EPS) * w + b


# ---------------------------------------------------------------------------
# Fused transformer kernel.
# grid = (batch_tiles, num_layers); layer axis innermost ("arbitrary").
# One grid step applies one transformer layer to a (B_TILE, L, D) activation
# block; the residual lives in a VMEM f32 scratch across layer steps.
# ---------------------------------------------------------------------------
def _transformer_kernel(n_heads,
                        x_ref, vec_ref, wqkv_ref, bqkv_ref, wo_ref,
                        wfc_ref, bfc_ref, wpr_ref, o_ref, xs_ref):
    layer = pl.program_id(1)
    n_layers = pl.num_programs(1)
    B, L, D = x_ref.shape
    BL = B * L
    hd = D // n_heads
    scale = 1.0 / float(hd) ** 0.5

    @pl.when(layer == 0)
    def _():
        # load the (new) batch tile into the residual scratch, flattened.
        xs_ref[...] = x_ref[...].astype(jnp.float32).reshape(BL, D)

    x = xs_ref[...]                                        # (BL, D) f32 residual

    vec = vec_ref[0].astype(jnp.float32)                   # (8, D) packed vectors
    ln1w, ln1b = vec[0:1], vec[1:2]
    ln2w, ln2b = vec[2:3], vec[3:4]
    b_o, b_pr = vec[4:5], vec[5:6]

    # ---- multi-head causal self-attention -------------------------------
    h = _layernorm_f32(x, ln1w, ln1b)
    qkv = jnp.dot(h.astype(DTYPE), wqkv_ref[0],
                  preferred_element_type=jnp.float32)       # MXU bf16 -> f32
    qkv = qkv + bqkv_ref[0].astype(jnp.float32)             # (BL, 3D) f32

    row = lax.broadcasted_iota(jnp.int32, (L, L), 0)
    col = lax.broadcasted_iota(jnp.int32, (L, L), 1)
    causal = (col <= row)[None, :, :]                        # (1, L, L)

    wo = wo_ref[0]                                           # (D, D) bf16
    attn = jnp.zeros((BL, D), jnp.float32)
    for hi in range(n_heads):                                # static unroll over heads
        lo = hi * hd
        q = (qkv[:, lo:lo + hd] * scale).astype(DTYPE).reshape(B, L, hd)
        k = qkv[:, D + lo:D + lo + hd].astype(DTYPE).reshape(B, L, hd)
        v = qkv[:, 2 * D + lo:2 * D + lo + hd].astype(DTYPE).reshape(B, L, hd)
        s = jnp.einsum('bqd,bkd->bqk', q, k,
                       preferred_element_type=jnp.float32)   # (B, L, L)
        s = jnp.where(causal, s, NEG_INF)
        s = s - jnp.max(s, axis=-1, keepdims=True)
        p = jnp.exp(s)
        p = p * pl.reciprocal(jnp.sum(p, axis=-1, keepdims=True), approx=True)
        ho = jnp.einsum('bqk,bkd->bqd', p.astype(DTYPE), v,
                        preferred_element_type=jnp.float32)  # (B, L, hd)
        # fold this head's output projection directly (no concatenate):
        attn = attn + jnp.dot(ho.reshape(BL, hd).astype(DTYPE),
                              wo[lo:lo + hd, :],
                              preferred_element_type=jnp.float32)
    x = x + attn + b_o

    # ---- MLP with QuickGELU ----------------------------------------------
    h2 = _layernorm_f32(x, ln2w, ln2b)
    h2 = jnp.dot(h2.astype(DTYPE), wfc_ref[0],
                 preferred_element_type=jnp.float32)
    h2 = h2 + bfc_ref[0].astype(jnp.float32)
    h2 = h2 * jax.nn.sigmoid(1.702 * h2)                     # QuickGELU
    h2 = jnp.dot(h2.astype(DTYPE), wpr_ref[0],
                 preferred_element_type=jnp.float32)
    x = x + h2 + b_pr

    xs_ref[...] = x

    @pl.when(layer == n_layers - 1)
    def _():
        o_ref[...] = x.reshape(B, L, D).astype(o_ref.dtype)


def run_transformer(x, stacked, n_heads, n_layers, b_tile):
    """x: (N, L, D) with N % b_tile == 0 and L % 8 == 0."""
    N, L, D = x.shape
    vec_d, wqkv, bqkv, wo, wfc, bfc, wpr = stacked
    n_btiles = N // b_tile

    def xmap(b, l):
        return (b, 0, 0)

    def wmap(b, l):
        return (l, 0, 0)

    # --- VMEM budget (bytes): streamed weights double-buffered + act blocks
    #     + f32 residual scratch + headroom for f32 qkv / MLP temps. ---------
    per_layer_w_bytes = sum(int(a.size) for a in stacked) * 2 // n_layers
    act_elems = b_tile * L * D
    needed = (2 * per_layer_w_bytes          # double-buffered per-layer weights
              + 2 * 2 * act_elems * 2        # x-in + out blocks, double-buffered, bf16
              + act_elems * 4                # f32 residual scratch
              + act_elems * 4 * 10)          # f32 qkv (3D) + MLP (4D) temps
    vmem_limit = int(min(max(2 * needed, 16 * 2 ** 20), 56 * 2 ** 20))

    tokens = N * L
    flops = int(n_layers * (24 * D * D * tokens + 4 * L * L * D * N))
    transcendentals = int(n_layers * (N * n_heads * L * L + tokens * 4 * D))
    bytes_accessed = int(per_layer_w_bytes * n_layers * n_btiles
                         + 4 * tokens * D)

    kernel = functools.partial(_transformer_kernel, n_heads)
    return pl.pallas_call(
        kernel,
        out_shape=jax.ShapeDtypeStruct((N, L, D), x.dtype),
        grid=(n_btiles, n_layers),
        in_specs=[
            pl.BlockSpec((b_tile, L, D), xmap),
            pl.BlockSpec((1,) + vec_d.shape[1:], wmap),
            pl.BlockSpec((1,) + wqkv.shape[1:], wmap),
            pl.BlockSpec((1,) + bqkv.shape[1:], wmap),
            pl.BlockSpec((1,) + wo.shape[1:], wmap),
            pl.BlockSpec((1,) + wfc.shape[1:], wmap),
            pl.BlockSpec((1,) + bfc.shape[1:], wmap),
            pl.BlockSpec((1,) + wpr.shape[1:], wmap),
        ],
        out_specs=pl.BlockSpec((b_tile, L, D), xmap),
        scratch_shapes=[pltpu.VMEM((b_tile * L, D), jnp.float32)],
        compiler_params=pltpu.CompilerParams(
            dimension_semantics=("parallel", "arbitrary"),
            vmem_limit_bytes=vmem_limit),
        cost_estimate=pl.CostEstimate(
            flops=flops, transcendentals=transcendentals,
            bytes_accessed=bytes_accessed),
    )(x, vec_d, wqkv, bqkv, wo, wfc, bfc, wpr)


# ---------------------------------------------------------------------------
# Fused final LayerNorm + text projection on the gathered EOT rows.
# LayerNorm is per-row, so applying it only to the EOT rows equals the torch
# code (LN the whole sequence, then gather).
# ---------------------------------------------------------------------------
def _eot_ln_proj_kernel(x_ref, lnw_ref, lnb_ref, proj_ref, o_ref):
    x = x_ref[...].astype(jnp.float32)                       # (N, D)
    y = _layernorm_f32(x, lnw_ref[...].astype(jnp.float32),
                       lnb_ref[...].astype(jnp.float32))
    o_ref[...] = jnp.dot(y.astype(DTYPE), proj_ref[...],
                         preferred_element_type=jnp.float32).astype(o_ref.dtype)


def eot_ln_project(feats, lnw, lnb, proj):
    N = feats.shape[0]
    Dp = proj.shape[1]
    return pl.pallas_call(
        _eot_ln_proj_kernel,
        out_shape=jax.ShapeDtypeStruct((N, Dp), feats.dtype),
        in_specs=[pl.BlockSpec(memory_space=pltpu.MemorySpace.VMEM)] * 4,
        out_specs=pl.BlockSpec(memory_space=pltpu.MemorySpace.VMEM),
    )(feats, lnw, lnb, proj)


# ---------------------------------------------------------------------------
# CustomTextEncoder.forward equivalent.
# ---------------------------------------------------------------------------
def custom_text_encoder_forward(params, token_ids, token_tensors=None,
                                enable_pos_emb=True):
    if token_tensors is not None:
        text_features = token_tensors
    else:
        text_features = jnp.take(params['token_embedding'], token_ids, axis=0)
    text_features = text_features.astype(DTYPE)
    x = (text_features + params['positional_embedding'].astype(DTYPE)
         if enable_pos_emb else text_features)                # (N, L, D)

    N, L, D = x.shape
    # Pad L to a sublane multiple of 8 (free flatten / unmasked loads) and
    # N to a multiple of the batch tile.  Causal masking protects real rows
    # from trailing pad; padded rows/sequences are sliced off afterwards.
    Lp = ((L + 7) // 8) * 8
    b_tile = max(1, min(N, max(1, 256 // Lp)))
    Np = ((N + b_tile - 1) // b_tile) * b_tile
    xp = jnp.pad(x, ((0, Np - N), (0, Lp - L), (0, 0)))

    y = run_transformer(xp, params['stacked'], params['n_heads'],
                        params['n_layers'], b_tile)
    y = y[:N, :L]                                             # (N, L, D)

    # torch returns the transformer output seq-first (pre-ln_final)
    text_feature = jnp.transpose(y, (1, 0, 2))                # (L, N, D)

    eot_idx = jnp.argmax(token_ids, axis=-1)                  # EOT has the largest token id
    eot_rows = y[jnp.arange(N), eot_idx]                      # (N, D)  (glue gather)
    tf = eot_ln_project(eot_rows, params['ln_final_w'], params['ln_final_b'],
                        params['text_projection'].astype(DTYPE))  # (N, Dp)
    return tf, text_feature


# ---------------------------------------------------------------------------
# Deterministic synthetic parameters (shapes implied by CLIP's text encoder).
# Per-layer weights are stacked along a leading (num_layers, ...) axis so the
# fused kernel can stream them; torch Linear weights (out, in) are stored
# pre-transposed to (in, out); small vectors packed into (num_layers, 8, D).
# ---------------------------------------------------------------------------
def make_params(key, vocab, ctx_len, width, heads, layers, proj_dim):
    D = width

    def nrm(k, shape, std):
        return (jax.random.normal(k, shape, jnp.float32) * std).astype(DTYPE)

    keys = iter(jax.random.split(key, 3 + 8 * layers))
    token_embedding = nrm(next(keys), (vocab, D), 0.02)
    positional_embedding = nrm(next(keys), (ctx_len, D), 0.01)
    text_projection = nrm(next(keys), (D, proj_dim), D ** -0.5)

    vec_l, wqkv_l, bqkv_l, wo_l, wfc_l, bfc_l, wpr_l = ([] for _ in range(7))
    for _ in range(layers):
        b_o = nrm(next(keys), (1, D), 0.01)
        b_pr = nrm(next(keys), (1, D), 0.01)
        # rows: ln1w, ln1b, ln2w, ln2b, b_o, b_pr, pad, pad
        vec = jnp.concatenate(
            [jnp.ones((1, D), DTYPE), jnp.zeros((1, D), DTYPE),
             jnp.ones((1, D), DTYPE), jnp.zeros((1, D), DTYPE),
             b_o, b_pr, jnp.zeros((2, D), DTYPE)], axis=0)     # (8, D)
        vec_l.append(vec)
        wqkv_l.append(nrm(next(keys), (D, 3 * D), D ** -0.5))
        bqkv_l.append(nrm(next(keys), (1, 3 * D), 0.01))
        wo_l.append(nrm(next(keys), (D, D), D ** -0.5))
        wfc_l.append(nrm(next(keys), (D, 4 * D), D ** -0.5))
        bfc_l.append(nrm(next(keys), (1, 4 * D), 0.01))
        wpr_l.append(nrm(next(keys), (4 * D, D), (4 * D) ** -0.5))

    stacked = (jnp.stack(vec_l), jnp.stack(wqkv_l), jnp.stack(bqkv_l),
               jnp.stack(wo_l), jnp.stack(wfc_l), jnp.stack(bfc_l),
               jnp.stack(wpr_l))

    return {
        'n_heads': heads,
        'n_layers': layers,
        'token_embedding': token_embedding,
        'positional_embedding': positional_embedding,
        'ln_final_w': jnp.ones((1, D), DTYPE),
        'ln_final_b': jnp.zeros((1, D), DTYPE),
        'text_projection': text_projection,
        'stacked': stacked,
    }


if __name__ == "__main__":
    # Small CLIP-like config: batch=2, seq=8, width=32, heads=4, layers=2.
    N, L, D, HEADS, LAYERS, VOCAB, DP = 2, 8, 32, 4, 2, 64, 32

    key = jax.random.PRNGKey(0)
    kp, kt = jax.random.split(key)
    params = make_params(kp, VOCAB, L, D, HEADS, LAYERS, DP)

    # Deterministic token ids: body tokens, an EOT token (= VOCAB-1, the max
    # id, so argmax finds it), then zero padding.
    body = jax.random.randint(kt, (N, L), 1, VOCAB - 2)
    eot_pos = jnp.array([L - 3, L - 1])
    pos = jnp.arange(L)[None, :]
    token_ids = jnp.where(pos == eot_pos[:, None], VOCAB - 1,
                          jnp.where(pos > eot_pos[:, None], 0, body)).astype(jnp.int32)

    tf, text_feature = custom_text_encoder_forward(
        params, token_ids, token_tensors=None, enable_pos_emb=True)
    jax.block_until_ready((tf, text_feature))

    assert tf.shape == (N, DP)
    assert text_feature.shape == (L, N, D)
    assert bool(jnp.all(jnp.isfinite(tf.astype(jnp.float32))))
    assert bool(jnp.all(jnp.isfinite(text_feature.astype(jnp.float32))))
    print("KERNEL_OK")
</pallas_src>

<mosaic_0001>
module attributes {stable_mosaic.version = 11 : i64} {
  func.func @_transformer_kernel(%arg0: i32, %arg1: i32, %arg2: memref<2x8x32xbf16, #tpu.memory_space<vmem>>, %arg3: memref<1x8x32xbf16, #tpu.memory_space<vmem>>, %arg4: memref<1x32x96xbf16, #tpu.memory_space<vmem>>, %arg5: memref<1x1x96xbf16, #tpu.memory_space<vmem>>, %arg6: memref<1x32x32xbf16, #tpu.memory_space<vmem>>, %arg7: memref<1x32x128xbf16, #tpu.memory_space<vmem>>, %arg8: memref<1x1x128xbf16, #tpu.memory_space<vmem>>, %arg9: memref<1x128x32xbf16, #tpu.memory_space<vmem>>, %arg10: memref<2x8x32xbf16, #tpu.memory_space<vmem>>, %arg11: memref<16x32xf32, #tpu.memory_space<vmem>>) attributes {dimension_semantics = [#tpu.dimension_semantics<parallel>, #tpu.dimension_semantics<arbitrary>], iteration_bounds = array<i64: 1, 2>, scalar_prefetch = 0 : i64, scratch_operands = 1 : i64, tpu.core_type = #tpu.core_type<tc>, window_params = [{transform_indices = @transform_0, window_bounds = array<i64: 2, 8, 32>}, {transform_indices = @transform_1, window_bounds = array<i64: 1, 8, 32>}, {transform_indices = @transform_2, window_bounds = array<i64: 1, 32, 96>}, {transform_indices = @transform_3, window_bounds = array<i64: 1, 1, 96>}, {transform_indices = @transform_4, window_bounds = array<i64: 1, 32, 32>}, {transform_indices = @transform_5, window_bounds = array<i64: 1, 32, 128>}, {transform_indices = @transform_6, window_bounds = array<i64: 1, 1, 128>}, {transform_indices = @transform_7, window_bounds = array<i64: 1, 128, 32>}, {transform_indices = @transform_8, window_bounds = array<i64: 2, 8, 32>}]} {
    %c0_i32 = arith.constant 0 : i32
    %0 = arith.cmpi eq, %arg1, %c0_i32 : i32
    %1 = arith.extui %0 : i1 to i32
    %c0_i32_0 = arith.constant 0 : i32
    %2 = arith.cmpi ne, %1, %c0_i32_0 : i32
    scf.if %2 {
      %c0_69 = arith.constant 0 : index
      %c0_70 = arith.constant 0 : index
      %c0_71 = arith.constant 0 : index
      %232 = vector.load %arg2[%c0_69, %c0_70, %c0_71] : memref<2x8x32xbf16, #tpu.memory_space<vmem>>, vector<2x8x32xbf16>
      %233 = arith.extf %232 : vector<2x8x32xbf16> to vector<2x8x32xf32>
      %234 = vector.shape_cast %233 : vector<2x8x32xf32> to vector<16x32xf32>
      %c0_72 = arith.constant 0 : index
      %c0_73 = arith.constant 0 : index
      %235 = vector.load %arg11[%c0_72, %c0_73] : memref<16x32xf32, #tpu.memory_space<vmem>>, vector<16x32xf32>
      tpu.vector_store %arg11[%c0_72, %c0_73], %234 {strides = array<i32>} : memref<16x32xf32, #tpu.memory_space<vmem>>, vector<16x32xf32>,
    } else {
    }
    %c0 = arith.constant 0 : index
    %c0_1 = arith.constant 0 : index
    %3 = vector.load %arg11[%c0, %c0_1] : memref<16x32xf32, #tpu.memory_space<vmem>>, vector<16x32xf32>
    %c0_2 = arith.constant 0 : index
    %c0_3 = arith.constant 0 : index
    %c0_4 = arith.constant 0 : index
    %4 = vector.load %arg3[%c0_2, %c0_3, %c0_4] : memref<1x8x32xbf16, #tpu.memory_space<vmem>>, vector<1x8x32xbf16>
    %5 = vector.shape_cast %4 : vector<1x8x32xbf16> to vector<8x32xbf16>
    %6 = arith.extf %5 : vector<8x32xbf16> to vector<8x32xf32>
    %7 = vector.extract_strided_slice %6 {offsets = [0, 0], sizes = [1, 32], strides = [1, 1]} : vector<8x32xf32> to vector<1x32xf32>
    %8 = vector.extract_strided_slice %6 {offsets = [1, 0], sizes = [1, 32], strides = [1, 1]} : vector<8x32xf32> to vector<1x32xf32>
    %9 = vector.extract_strided_slice %6 {offsets = [2, 0], sizes = [1, 32], strides = [1, 1]} : vector<8x32xf32> to vector<1x32xf32>
    %10 = vector.extract_strided_slice %6 {offsets = [3, 0], sizes = [1, 32], strides = [1, 1]} : vector<8x32xf32> to vector<1x32xf32>
    %11 = vector.extract_strided_slice %6 {offsets = [4, 0], sizes = [1, 32], strides = [1, 1]} : vector<8x32xf32> to vector<1x32xf32>
    %12 = vector.extract_strided_slice %6 {offsets = [5, 0], sizes = [1, 32], strides = [1, 1]} : vector<8x32xf32> to vector<1x32xf32>
    %cst = arith.constant dense<0.000000e+00> : vector<16xf32>
    %13 = vector.multi_reduction <add>, %3, %cst [1] : vector<16x32xf32> to vector<16xf32>
    %14 = vector.shape_cast %13 : vector<16xf32> to vector<16x1xf32>
    %cst_5 = arith.constant 3.200000e+01 : f32
    %15 = vector.broadcast %cst_5 : f32 to vector<16x1xf32>
    %16 = arith.divf %14, %15 : vector<16x1xf32>
    %17 = vector.broadcast %16 : vector<16x1xf32> to vector<16x32xf32>
    %18 = arith.subf %3, %17 : vector<16x32xf32>
    %19 = arith.mulf %18, %18 : vector<16x32xf32>
    %cst_6 = arith.constant dense<0.000000e+00> : vector<16xf32>
    %20 = vector.multi_reduction <add>, %19, %cst_6 [1] : vector<16x32xf32> to vector<16xf32>
    %21 = vector.shape_cast %20 : vector<16xf32> to vector<16x1xf32>
    %cst_7 = arith.constant 3.200000e+01 : f32
    %22 = vector.broadcast %cst_7 : f32 to vector<16x1xf32>
    %23 = arith.divf %21, %22 : vector<16x1xf32>
    %cst_8 = arith.constant 9.99999974E-6 : f32
    %24 = vector.broadcast %cst_8 : f32 to vector<16x1xf32>
    %25 = arith.addf %23, %24 : vector<16x1xf32>
    %26 = math.rsqrt %25 : vector<16x1xf32>
    %27 = vector.broadcast %26 : vector<16x1xf32> to vector<16x32xf32>
    %28 = arith.mulf %18, %27 : vector<16x32xf32>
    %29 = vector.broadcast %7 : vector<1x32xf32> to vector<16x32xf32>
    %30 = arith.mulf %28, %29 : vector<16x32xf32>
    %31 = vector.broadcast %8 : vector<1x32xf32> to vector<16x32xf32>
    %32 = arith.addf %30, %31 : vector<16x32xf32>
    %33 = arith.truncf %32 : vector<16x32xf32> to vector<16x32xbf16>
    %c0_9 = arith.constant 0 : index
    %c0_10 = arith.constant 0 : index
    %c0_11 = arith.constant 0 : index
    %34 = vector.load %arg4[%c0_9, %c0_10, %c0_11] : memref<1x32x96xbf16, #tpu.memory_space<vmem>>, vector<1x32x96xbf16>
    %35 = vector.shape_cast %34 : vector<1x32x96xbf16> to vector<32x96xbf16>
    %cst_12 = arith.constant dense<0.000000e+00> : vector<16x96xf32>
    %36 = tpu.matmul %33, %35, %cst_12 {dimension_numbers = #tpu.dot_dimension_numbers<[1], [0], [0], [1], [0, 0, 1, 1], [], []>} : vector<16x32xbf16>, vector<32x96xbf16>, vector<16x96xf32> -> vector<16x96xf32>
    %c0_13 = arith.constant 0 : index
    %c0_14 = arith.constant 0 : index
    %c0_15 = arith.constant 0 : index
    %37 = vector.load %arg5[%c0_13, %c0_14, %c0_15] : memref<1x1x96xbf16, #tpu.memory_space<vmem>>, vector<1x1x96xbf16>
    %38 = vector.shape_cast %37 : vector<1x1x96xbf16> to vector<1x96xbf16>
    %39 = arith.extf %38 : vector<1x96xbf16> to vector<1x96xf32>
    %40 = vector.broadcast %39 : vector<1x96xf32> to vector<16x96xf32>
    %41 = arith.addf %36, %40 : vector<16x96xf32>
    %42 = tpu.iota {dimensions = array<i32: 0>} : vector<8x8xi32>
    %43 = tpu.iota {dimensions = array<i32: 1>} : vector<8x8xi32>
    %44 = arith.cmpi sle, %43, %42 : vector<8x8xi32>
    %45 = vector.shape_cast %44 : vector<8x8xi1> to vector<1x8x8xi1>
    %c0_16 = arith.constant 0 : index
    %c0_17 = arith.constant 0 : index
    %c0_18 = arith.constant 0 : index
    %46 = vector.load %arg6[%c0_16, %c0_17, %c0_18] : memref<1x32x32xbf16, #tpu.memory_space<vmem>>, vector<1x32x32xbf16>
    %47 = vector.shape_cast %46 : vector<1x32x32xbf16> to vector<32x32xbf16>
    %cst_19 = arith.constant 0.000000e+00 : f32
    %48 = vector.broadcast %cst_19 : f32 to vector<16x32xf32>
    %49 = vector.extract_strided_slice %41 {offsets = [0, 0], sizes = [16, 8], strides = [1, 1]} : vector<16x96xf32> to vector<16x8xf32>
    %cst_20 = arith.constant 0.353553385 : f32
    %50 = vector.broadcast %cst_20 : f32 to vector<16x8xf32>
    %51 = arith.mulf %49, %50 : vector<16x8xf32>
    %52 = arith.truncf %51 : vector<16x8xf32> to vector<16x8xbf16>
    %53 = vector.shape_cast %52 : vector<16x8xbf16> to vector<2x8x8xbf16>
    %54 = vector.extract_strided_slice %41 {offsets = [0, 32], sizes = [16, 8], strides = [1, 1]} : vector<16x96xf32> to vector<16x8xf32>
    %55 = arith.truncf %54 : vector<16x8xf32> to vector<16x8xbf16>
    %56 = vector.shape_cast %55 : vector<16x8xbf16> to vector<2x8x8xbf16>
    %57 = vector.extract_strided_slice %41 {offsets = [0, 64], sizes = [16, 8], strides = [1, 1]} : vector<16x96xf32> to vector<16x8xf32>
    %58 = arith.truncf %57 : vector<16x8xf32> to vector<16x8xbf16>
    %59 = vector.shape_cast %58 : vector<16x8xbf16> to vector<2x8x8xbf16>
    "tpu.trace_start"() <{level = 10 : i32, message = "bqd,bkd->bqk"}> : () -> ()
    %cst_21 = arith.constant dense<0.000000e+00> : vector<2x8x8xf32>
    %60 = tpu.matmul %53, %56, %cst_21 {dimension_numbers = #tpu.dot_dimension_numbers<[2], [2], [1], [1], [0, 0, 0, 1, 1, 1], [0], [0]>} : vector<2x8x8xbf16>, vector<2x8x8xbf16>, vector<2x8x8xf32> -> vector<2x8x8xf32>
    %cst_22 = arith.constant -1.000000e+30 : f32
    "tpu.trace_stop"() : () -> ()
    %61 = vector.shape_cast %45 : vector<1x8x8xi1> to vector<1x8x8xi1>
    %62 = vector.broadcast %61 : vector<1x8x8xi1> to vector<2x8x8xi1>
    %63 = vector.broadcast %cst_22 : f32 to vector<2x8x8xf32>
    %64 = arith.select %62, %60, %63 : vector<2x8x8xi1>, vector<2x8x8xf32>
    %cst_23 = arith.constant dense<0xFF800000> : vector<2x8xf32>
    %65 = vector.multi_reduction <maximumf>, %64, %cst_23 [2] : vector<2x8x8xf32> to vector<2x8xf32>
    %66 = vector.shape_cast %65 : vector<2x8xf32> to vector<2x8x1xf32>
    %67 = vector.broadcast %66 : vector<2x8x1xf32> to vector<2x8x8xf32>
    %68 = arith.subf %64, %67 : vector<2x8x8xf32>
    %69 = math.exp %68 : vector<2x8x8xf32>
    %cst_24 = arith.constant dense<0.000000e+00> : vector<2x8xf32>
    %70 = vector.multi_reduction <add>, %69, %cst_24 [2] : vector<2x8x8xf32> to vector<2x8xf32>
    %71 = vector.shape_cast %70 : vector<2x8xf32> to vector<2x8x1xf32>
    %72 = tpu.reciprocal %71 {approx = true} : vector<2x8x1xf32> -> vector<2x8x1xf32>
    %73 = vector.broadcast %72 : vector<2x8x1xf32> to vector<2x8x8xf32>
    %74 = arith.mulf %69, %73 : vector<2x8x8xf32>
    %75 = arith.truncf %74 : vector<2x8x8xf32> to vector<2x8x8xbf16>
    "tpu.trace_start"() <{level = 10 : i32, message = "bqk,bkd->bqd"}> : () -> ()
    %cst_25 = arith.constant dense<0.000000e+00> : vector<2x8x8xf32>
    %76 = tpu.matmul %75, %59, %cst_25 {dimension_numbers = #tpu.dot_dimension_numbers<[2], [1], [1], [2], [0, 0, 0, 1, 1, 2], [0], [0]>} : vector<2x8x8xbf16>, vector<2x8x8xbf16>, vector<2x8x8xf32> -> vector<2x8x8xf32>
    "tpu.trace_stop"() : () -> ()
    %77 = vector.shape_cast %76 : vector<2x8x8xf32> to vector<16x8xf32>
    %78 = arith.truncf %77 : vector<16x8xf32> to vector<16x8xbf16>
    %79 = vector.extract_strided_slice %47 {offsets = [0, 0], sizes = [8, 32], strides = [1, 1]} : vector<32x32xbf16> to vector<8x32xbf16>
    %cst_26 = arith.constant dense<0.000000e+00> : vector<16x32xf32>
    %80 = tpu.matmul %78, %79, %cst_26 {dimension_numbers = #tpu.dot_dimension_numbers<[1], [0], [0], [1], [0, 0, 1, 1], [], []>} : vector<16x8xbf16>, vector<8x32xbf16>, vector<16x32xf32> -> vector<16x32xf32>
    %81 = arith.addf %48, %80 : vector<16x32xf32>
    %82 = vector.extract_strided_slice %41 {offsets = [0, 8], sizes = [16, 8], strides = [1, 1]} : vector<16x96xf32> to vector<16x8xf32>
    %cst_27 = arith.constant 0.353553385 : f32
    %83 = vector.broadcast %cst_27 : f32 to vector<16x8xf32>
    %84 = arith.mulf %82, %83 : vector<16x8xf32>
    %85 = arith.truncf %84 : vector<16x8xf32> to vector<16x8xbf16>
    %86 = vector.shape_cast %85 : vector<16x8xbf16> to vector<2x8x8xbf16>
    %87 = vector.extract_strided_slice %41 {offsets = [0, 40], sizes = [16, 8], strides = [1, 1]} : vector<16x96xf32> to vector<16x8xf32>
    %88 = arith.truncf %87 : vector<16x8xf32> to vector<16x8xbf16>
    %89 = vector.shape_cast %88 : vector<16x8xbf16> to vector<2x8x8xbf16>
    %90 = vector.extract_strided_slice %41 {offsets = [0, 72], sizes = [16, 8], strides = [1, 1]} : vector<16x96xf32> to vector<16x8xf32>
    %91 = arith.truncf %90 : vector<16x8xf32> to vector<16x8xbf16>
    %92 = vector.shape_cast %91 : vector<16x8xbf16> to vector<2x8x8xbf16>
    "tpu.trace_start"() <{level = 10 : i32, message = "bqd,bkd->bqk"}> : () -> ()
    %cst_28 = arith.constant dense<0.000000e+00> : vector<2x8x8xf32>
    %93 = tpu.matmul %86, %89, %cst_28 {dimension_numbers = #tpu.dot_dimension_numbers<[2], [2], [1], [1], [0, 0, 0, 1, 1, 1], [0], [0]>} : vector<2x8x8xbf16>, vector<2x8x8xbf16>, vector<2x8x8xf32> -> vector<2x8x8xf32>
    %cst_29 = arith.constant -1.000000e+30 : f32
    "tpu.trace_stop"() : () -> ()
    %94 = vector.shape_cast %45 : vector<1x8x8xi1> to vector<1x8x8xi1>
    %95 = vector.broadcast %94 : vector<1x8x8xi1> to vector<2x8x8xi1>
    %96 = vector.broadcast %cst_29 : f32 to vector<2x8x8xf32>
    %97 = arith.select %95, %93, %96 : vector<2x8x8xi1>, vector<2x8x8xf32>
    %cst_30 = arith.constant dense<0xFF800000> : vector<2x8xf32>
    %98 = vector.multi_reduction <maximumf>, %97, %cst_30 [2] : vector<2x8x8xf32> to vector<2x8xf32>
    %99 = vector.shape_cast %98 : vector<2x8xf32> to vector<2x8x1xf32>
    %100 = vector.broadcast %99 : vector<2x8x1xf32> to vector<2x8x8xf32>
    %101 = arith.subf %97, %100 : vector<2x8x8xf32>
    %102 = math.exp %101 : vector<2x8x8xf32>
    %cst_31 = arith.constant dense<0.000000e+00> : vector<2x8xf32>
    %103 = vector.multi_reduction <add>, %102, %cst_31 [2] : vector<2x8x8xf32> to vector<2x8xf32>
    %104 = vector.shape_cast %103 : vector<2x8xf32> to vector<2x8x1xf32>
    %105 = tpu.reciprocal %104 {approx = true} : vector<2x8x1xf32> -> vector<2x8x1xf32>
    %106 = vector.broadcast %105 : vector<2x8x1xf32> to vector<2x8x8xf32>
    %107 = arith.mulf %102, %106 : vector<2x8x8xf32>
    %108 = arith.truncf %107 : vector<2x8x8xf32> to vector<2x8x8xbf16>
    "tpu.trace_start"() <{level = 10 : i32, message = "bqk,bkd->bqd"}> : () -> ()
    %cst_32 = arith.constant dense<0.000000e+00> : vector<2x8x8xf32>
    %109 = tpu.matmul %108, %92, %cst_32 {dimension_numbers = #tpu.dot_dimension_numbers<[2], [1], [1], [2], [0, 0, 0, 1, 1, 2], [0], [0]>} : vector<2x8x8xbf16>, vector<2x8x8xbf16>, vector<2x8x8xf32> -> vector<2x8x8xf32>
    "tpu.trace_stop"() : () -> ()
    %110 = vector.shape_cast %109 : vector<2x8x8xf32> to vector<16x8xf32>
    %111 = arith.truncf %110 : vector<16x8xf32> to vector<16x8xbf16>
    %112 = vector.extract_strided_slice %47 {offsets = [8, 0], sizes = [8, 32], strides = [1, 1]} : vector<32x32xbf16> to vector<8x32xbf16>
    %cst_33 = arith.constant dense<0.000000e+00> : vector<16x32xf32>
    %113 = tpu.matmul %111, %112, %cst_33 {dimension_numbers = #tpu.dot_dimension_numbers<[1], [0], [0], [1], [0, 0, 1, 1], [], []>} : vector<16x8xbf16>, vector<8x32xbf16>, vector<16x32xf32> -> vector<16x32xf32>
    %114 = arith.addf %81, %113 : vector<16x32xf32>
    %115 = vector.extract_strided_slice %41 {offsets = [0, 16], sizes = [16, 8], strides = [1, 1]} : vector<16x96xf32> to vector<16x8xf32>
    %cst_34 = arith.constant 0.353553385 : f32
    %116 = vector.broadcast %cst_34 : f32 to vector<16x8xf32>
    %117 = arith.mulf %115, %116 : vector<16x8xf32>
    %118 = arith.truncf %117 : vector<16x8xf32> to vector<16x8xbf16>
    %119 = vector.shape_cast %118 : vector<16x8xbf16> to vector<2x8x8xbf16>
    %120 = vector.extract_strided_slice %41 {offsets = [0, 48], sizes = [16, 8], strides = [1, 1]} : vector<16x96xf32> to vector<16x8xf32>
    %121 = arith.truncf %120 : vector<16x8xf32> to vector<16x8xbf16>
    %122 = vector.shape_cast %121 : vector<16x8xbf16> to vector<2x8x8xbf16>
    %123 = vector.extract_strided_slice %41 {offsets = [0, 80], sizes = [16, 8], strides = [1, 1]} : vector<16x96xf32> to vector<16x8xf32>
    %124 = arith.truncf %123 : vector<16x8xf32> to vector<16x8xbf16>
    %125 = vector.shape_cast %124 : vector<16x8xbf16> to vector<2x8x8xbf16>
    "tpu.trace_start"() <{level = 10 : i32, message = "bqd,bkd->bqk"}> : () -> ()
    %cst_35 = arith.constant dense<0.000000e+00> : vector<2x8x8xf32>
    %126 = tpu.matmul %119, %122, %cst_35 {dimension_numbers = #tpu.dot_dimension_numbers<[2], [2], [1], [1], [0, 0, 0, 1, 1, 1], [0], [0]>} : vector<2x8x8xbf16>, vector<2x8x8xbf16>, vector<2x8x8xf32> -> vector<2x8x8xf32>
    %cst_36 = arith.constant -1.000000e+30 : f32
    "tpu.trace_stop"() : () -> ()
    %127 = vector.shape_cast %45 : vector<1x8x8xi1> to vector<1x8x8xi1>
    %128 = vector.broadcast %127 : vector<1x8x8xi1> to vector<2x8x8xi1>
    %129 = vector.broadcast %cst_36 : f32 to vector<2x8x8xf32>
    %130 = arith.select %128, %126, %129 : vector<2x8x8xi1>, vector<2x8x8xf32>
    %cst_37 = arith.constant dense<0xFF800000> : vector<2x8xf32>
    %131 = vector.multi_reduction <maximumf>, %130, %cst_37 [2] : vector<2x8x8xf32> to vector<2x8xf32>
    %132 = vector.shape_cast %131 : vector<2x8xf32> to vector<2x8x1xf32>
    %133 = vector.broadcast %132 : vector<2x8x1xf32> to vector<2x8x8xf32>
    %134 = arith.subf %130, %133 : vector<2x8x8xf32>
    %135 = math.exp %134 : vector<2x8x8xf32>
    %cst_38 = arith.constant dense<0.000000e+00> : vector<2x8xf32>
    %136 = vector.multi_reduction <add>, %135, %cst_38 [2] : vector<2x8x8xf32> to vector<2x8xf32>
    %137 = vector.shape_cast %136 : vector<2x8xf32> to vector<2x8x1xf32>
    %138 = tpu.reciprocal %137 {approx = true} : vector<2x8x1xf32> -> vector<2x8x1xf32>
    %139 = vector.broadcast %138 : vector<2x8x1xf32> to vector<2x8x8xf32>
    %140 = arith.mulf %135, %139 : vector<2x8x8xf32>
    %141 = arith.truncf %140 : vector<2x8x8xf32> to vector<2x8x8xbf16>
    "tpu.trace_start"() <{level = 10 : i32, message = "bqk,bkd->bqd"}> : () -> ()
    %cst_39 = arith.constant dense<0.000000e+00> : vector<2x8x8xf32>
    %142 = tpu.matmul %141, %125, %cst_39 {dimension_numbers = #tpu.dot_dimension_numbers<[2], [1], [1], [2], [0, 0, 0, 1, 1, 2], [0], [0]>} : vector<2x8x8xbf16>, vector<2x8x8xbf16>, vector<2x8x8xf32> -> vector<2x8x8xf32>
    "tpu.trace_stop"() : () -> ()
    %143 = vector.shape_cast %142 : vector<2x8x8xf32> to vector<16x8xf32>
    %144 = arith.truncf %143 : vector<16x8xf32> to vector<16x8xbf16>
    %145 = vector.extract_strided_slice %47 {offsets = [16, 0], sizes = [8, 32], strides = [1, 1]} : vector<32x32xbf16> to vector<8x32xbf16>
    %cst_40 = arith.constant dense<0.000000e+00> : vector<16x32xf32>
    %146 = tpu.matmul %144, %145, %cst_40 {dimension_numbers = #tpu.dot_dimension_numbers<[1], [0], [0], [1], [0, 0, 1, 1], [], []>} : vector<16x8xbf16>, vector<8x32xbf16>, vector<16x32xf32> -> vector<16x32xf32>
    %147 = arith.addf %114, %146 : vector<16x32xf32>
    %148 = vector.extract_strided_slice %41 {offsets = [0, 24], sizes = [16, 8], strides = [1, 1]} : vector<16x96xf32> to vector<16x8xf32>
    %cst_41 = arith.constant 0.353553385 : f32
    %149 = vector.broadcast %cst_41 : f32 to vector<16x8xf32>
    %150 = arith.mulf %148, %149 : vector<16x8xf32>
    %151 = arith.truncf %150 : vector<16x8xf32> to vector<16x8xbf16>
    %152 = vector.shape_cast %151 : vector<16x8xbf16> to vector<2x8x8xbf16>
    %153 = vector.extract_strided_slice %41 {offsets = [0, 56], sizes = [16, 8], strides = [1, 1]} : vector<16x96xf32> to vector<16x8xf32>
    %154 = arith.truncf %153 : vector<16x8xf32> to vector<16x8xbf16>
    %155 = vector.shape_cast %154 : vector<16x8xbf16> to vector<2x8x8xbf16>
    %156 = vector.extract_strided_slice %41 {offsets = [0, 88], sizes = [16, 8], strides = [1, 1]} : vector<16x96xf32> to vector<16x8xf32>
    %157 = arith.truncf %156 : vector<16x8xf32> to vector<16x8xbf16>
    %158 = vector.shape_cast %157 : vector<16x8xbf16> to vector<2x8x8xbf16>
    "tpu.trace_start"() <{level = 10 : i32, message = "bqd,bkd->bqk"}> : () -> ()
    %cst_42 = arith.constant dense<0.000000e+00> : vector<2x8x8xf32>
    %159 = tpu.matmul %152, %155, %cst_42 {dimension_numbers = #tpu.dot_dimension_numbers<[2], [2], [1], [1], [0, 0, 0, 1, 1, 1], [0], [0]>} : vector<2x8x8xbf16>, vector<2x8x8xbf16>, vector<2x8x8xf32> -> vector<2x8x8xf32>
    %cst_43 = arith.constant -1.000000e+30 : f32
    "tpu.trace_stop"() : () -> ()
    %160 = vector.shape_cast %45 : vector<1x8x8xi1> to vector<1x8x8xi1>
    %161 = vector.broadcast %160 : vector<1x8x8xi1> to vector<2x8x8xi1>
    %162 = vector.broadcast %cst_43 : f32 to vector<2x8x8xf32>
    %163 = arith.select %161, %159, %162 : vector<2x8x8xi1>, vector<2x8x8xf32>
    %cst_44 = arith.constant dense<0xFF800000> : vector<2x8xf32>
    %164 = vector.multi_reduction <maximumf>, %163, %cst_44 [2] : vector<2x8x8xf32> to vector<2x8xf32>
    %165 = vector.shape_cast %164 : vector<2x8xf32> to vector<2x8x1xf32>
    %166 = vector.broadcast %165 : vector<2x8x1xf32> to vector<2x8x8xf32>
    %167 = arith.subf %163, %166 : vector<2x8x8xf32>
    %168 = math.exp %167 : vector<2x8x8xf32>
    %cst_45 = arith.constant dense<0.000000e+00> : vector<2x8xf32>
    %169 = vector.multi_reduction <add>, %168, %cst_45 [2] : vector<2x8x8xf32> to vector<2x8xf32>
    %170 = vector.shape_cast %169 : vector<2x8xf32> to vector<2x8x1xf32>
    %171 = tpu.reciprocal %170 {approx = true} : vector<2x8x1xf32> -> vector<2x8x1xf32>
    %172 = vector.broadcast %171 : vector<2x8x1xf32> to vector<2x8x8xf32>
    %173 = arith.mulf %168, %172 : vector<2x8x8xf32>
    %174 = arith.truncf %173 : vector<2x8x8xf32> to vector<2x8x8xbf16>
    "tpu.trace_start"() <{level = 10 : i32, message = "bqk,bkd->bqd"}> : () -> ()
    %cst_46 = arith.constant dense<0.000000e+00> : vector<2x8x8xf32>
    %175 = tpu.matmul %174, %158, %cst_46 {dimension_numbers = #tpu.dot_dimension_numbers<[2], [1], [1], [2], [0, 0, 0, 1, 1, 2], [0], [0]>} : vector<2x8x8xbf16>, vector<2x8x8xbf16>, vector<2x8x8xf32> -> vector<2x8x8xf32>
    "tpu.trace_stop"() : () -> ()
    %176 = vector.shape_cast %175 : vector<2x8x8xf32> to vector<16x8xf32>
    %177 = arith.truncf %176 : vector<16x8xf32> to vector<16x8xbf16>
    %178 = vector.extract_strided_slice %47 {offsets = [24, 0], sizes = [8, 32], strides = [1, 1]} : vector<32x32xbf16> to vector<8x32xbf16>
    %cst_47 = arith.constant dense<0.000000e+00> : vector<16x32xf32>
    %179 = tpu.matmul %177, %178, %cst_47 {dimension_numbers = #tpu.dot_dimension_numbers<[1], [0], [0], [1], [0, 0, 1, 1], [], []>} : vector<16x8xbf16>, vector<8x32xbf16>, vector<16x32xf32> -> vector<16x32xf32>
    %180 = arith.addf %147, %179 : vector<16x32xf32>
    %181 = arith.addf %3, %180 : vector<16x32xf32>
    %182 = vector.broadcast %11 : vector<1x32xf32> to vector<16x32xf32>
    %183 = arith.addf %181, %182 : vector<16x32xf32>
    %cst_48 = arith.constant dense<0.000000e+00> : vector<16xf32>
    %184 = vector.multi_reduction <add>, %183, %cst_48 [1] : vector<16x32xf32> to vector<16xf32>
    %185 = vector.shape_cast %184 : vector<16xf32> to vector<16x1xf32>
    %cst_49 = arith.constant 3.200000e+01 : f32
    %186 = vector.broadcast %cst_49 : f32 to vector<16x1xf32>
    %187 = arith.divf %185, %186 : vector<16x1xf32>
    %188 = vector.broadcast %187 : vector<16x1xf32> to vector<16x32xf32>
    %189 = arith.subf %183, %188 : vector<16x32xf32>
    %190 = arith.mulf %189, %189 : vector<16x32xf32>
    %cst_50 = arith.constant dense<0.000000e+00> : vector<16xf32>
    %191 = vector.multi_reduction <add>, %190, %cst_50 [1] : vector<16x32xf32> to vector<16xf32>
    %192 = vector.shape_cast %191 : vector<16xf32> to vector<16x1xf32>
    %cst_51 = arith.constant 3.200000e+01 : f32
    %193 = vector.broadcast %cst_51 : f32 to vector<16x1xf32>
    %194 = arith.divf %192, %193 : vector<16x1xf32>
    %cst_52 = arith.constant 9.99999974E-6 : f32
    %195 = vector.broadcast %cst_52 : f32 to vector<16x1xf32>
    %196 = arith.addf %194, %195 : vector<16x1xf32>
    %197 = math.rsqrt %196 : vector<16x1xf32>
    %198 = vector.broadcast %197 : vector<16x1xf32> to vector<16x32xf32>
    %199 = arith.mulf %189, %198 : vector<16x32xf32>
    %200 = vector.broadcast %9 : vector<1x32xf32> to vector<16x32xf32>
    %201 = arith.mulf %199, %200 : vector<16x32xf32>
    %202 = vector.broadcast %10 : vector<1x32xf32> to vector<16x32xf32>
    %203 = arith.addf %201, %202 : vector<16x32xf32>
    %204 = arith.truncf %203 : vector<16x32xf32> to vector<16x32xbf16>
    %c0_53 = arith.constant 0 : index
    %c0_54 = arith.constant 0 : index
    %c0_55 = arith.constant 0 : index
    %205 = vector.load %arg7[%c0_53, %c0_54, %c0_55] : memref<1x32x128xbf16, #tpu.memory_space<vmem>>, vector<1x32x128xbf16>
    %206 = vector.shape_cast %205 : vector<1x32x128xbf16> to vector<32x128xbf16>
    %cst_56 = arith.constant dense<0.000000e+00> : vector<16x128xf32>
    %207 = tpu.matmul %204, %206, %cst_56 {dimension_numbers = #tpu.dot_dimension_numbers<[1], [0], [0], [1], [0, 0, 1, 1], [], []>} : vector<16x32xbf16>, vector<32x128xbf16>, vector<16x128xf32> -> vector<16x128xf32>
    %c0_57 = arith.constant 0 : index
    %c0_58 = arith.constant 0 : index
    %c0_59 = arith.constant 0 : index
    %208 = vector.load %arg8[%c0_57, %c0_58, %c0_59] : memref<1x1x128xbf16, #tpu.memory_space<vmem>>, vector<1x1x128xbf16>
    %209 = vector.shape_cast %208 : vector<1x1x128xbf16> to vector<1x128xbf16>
    %210 = arith.extf %209 : vector<1x128xbf16> to vector<1x128xf32>
    %211 = vector.broadcast %210 : vector<1x128xf32> to vector<16x128xf32>
    %212 = arith.addf %207, %211 : vector<16x128xf32>
    %cst_60 = arith.constant 1.702000e+00 : f32
    %213 = vector.broadcast %cst_60 : f32 to vector<16x128xf32>
    %214 = arith.mulf %213, %212 : vector<16x128xf32>
    %215 = arith.negf %214 : vector<16x128xf32>
    %216 = math.exp %215 : vector<16x128xf32>
    %cst_61 = arith.constant 1.000000e+00 : f32
    %217 = vector.broadcast %cst_61 : f32 to vector<16x128xf32>
    %218 = arith.addf %217, %216 : vector<16x128xf32>
    %219 = arith.divf %217, %218 : vector<16x128xf32>
    %220 = arith.mulf %212, %219 : vector<16x128xf32>
    %221 = arith.truncf %220 : vector<16x128xf32> to vector<16x128xbf16>
    %c0_62 = arith.constant 0 : index
    %c0_63 = arith.constant 0 : index
    %c0_64 = arith.constant 0 : index
    %222 = vector.load %arg9[%c0_62, %c0_63, %c0_64] : memref<1x128x32xbf16, #tpu.memory_space<vmem>>, vector<1x128x32xbf16>
    %223 = vector.shape_cast %222 : vector<1x128x32xbf16> to vector<128x32xbf16>
    %cst_65 = arith.constant dense<0.000000e+00> : vector<16x32xf32>
    %224 = tpu.matmul %221, %223, %cst_65 {dimension_numbers = #tpu.dot_dimension_numbers<[1], [0], [0], [1], [0, 0, 1, 1], [], []>} : vector<16x128xbf16>, vector<128x32xbf16>, vector<16x32xf32> -> vector<16x32xf32>
    %225 = arith.addf %183, %224 : vector<16x32xf32>
    %226 = vector.broadcast %12 : vector<1x32xf32> to vector<16x32xf32>
    %227 = arith.addf %225, %226 : vector<16x32xf32>
    %c0_66 = arith.constant 0 : index
    %c0_67 = arith.constant 0 : index
    %228 = vector.load %arg11[%c0_66, %c0_67] : memref<16x32xf32, #tpu.memory_space<vmem>>, vector<16x32xf32>
    tpu.vector_store %arg11[%c0_66, %c0_67], %227 {strides = array<i32>} : memref<16x32xf32, #tpu.memory_space<vmem>>, vector<16x32xf32>,
    %c1_i32 = arith.constant 1 : i32
    %229 = arith.cmpi eq, %arg1, %c1_i32 : i32
    %230 = arith.extui %229 : i1 to i32
    %c0_i32_68 = arith.constant 0 : i32
    %231 = arith.cmpi ne, %230, %c0_i32_68 : i32
    scf.if %231 {
      %232 = vector.shape_cast %227 : vector<16x32xf32> to vector<2x8x32xf32>
      %233 = arith.truncf %232 : vector<2x8x32xf32> to vector<2x8x32xbf16>
      %c0_69 = arith.constant 0 : index
      %c0_70 = arith.constant 0 : index
      %c0_71 = arith.constant 0 : index
      %234 = vector.load %arg10[%c0_69, %c0_70, %c0_71] : memref<2x8x32xbf16, #tpu.memory_space<vmem>>, vector<2x8x32xbf16>
      tpu.vector_store %arg10[%c0_69, %c0_70, %c0_71], %233 {strides = array<i32>} : memref<2x8x32xbf16, #tpu.memory_space<vmem>>, vector<2x8x32xbf16>,
    } else {
    }
    return
  }
  func.func @transform_0(%arg0: i32, %arg1: i32) -> (i32, i32, i32) {
    %c0_i32 = arith.constant 0 : i32
    %c0_i32_0 = arith.constant 0 : i32
    %c0_i32_1 = arith.constant 0 : i32
    return %arg0, %c0_i32, %c0_i32_0 : i32, i32, i32
  }
  func.func @transform_1(%arg0: i32, %arg1: i32) -> (i32, i32, i32) {
    %c0_i32 = arith.constant 0 : i32
    %c0_i32_0 = arith.constant 0 : i32
    %c0_i32_1 = arith.constant 0 : i32
    return %arg1, %c0_i32, %c0_i32_0 : i32, i32, i32
  }
  func.func @transform_2(%arg0: i32, %arg1: i32) -> (i32, i32, i32) {
    %c0_i32 = arith.constant 0 : i32
    %c0_i32_0 = arith.constant 0 : i32
    %c0_i32_1 = arith.constant 0 : i32
    return %arg1, %c0_i32, %c0_i32_0 : i32, i32, i32
  }
  func.func @transform_3(%arg0: i32, %arg1: i32) -> (i32, i32, i32) {
    %c0_i32 = arith.constant 0 : i32
    %c0_i32_0 = arith.constant 0 : i32
    %c0_i32_1 = arith.constant 0 : i32
    return %arg1, %c0_i32, %c0_i32_0 : i32, i32, i32
  }
  func.func @transform_4(%arg0: i32, %arg1: i32) -> (i32, i32, i32) {
    %c0_i32 = arith.constant 0 : i32
    %c0_i32_0 = arith.constant 0 : i32
    %c0_i32_1 = arith.constant 0 : i32
    return %arg1, %c0_i32, %c0_i32_0 : i32, i32, i32
  }
  func.func @transform_5(%arg0: i32, %arg1: i32) -> (i32, i32, i32) {
    %c0_i32 = arith.constant 0 : i32
    %c0_i32_0 = arith.constant 0 : i32
    %c0_i32_1 = arith.constant 0 : i32
    return %arg1, %c0_i32, %c0_i32_0 : i32, i32, i32
  }
  func.func @transform_6(%arg0: i32, %arg1: i32) -> (i32, i32, i32) {
    %c0_i32 = arith.constant 0 : i32
    %c0_i32_0 = arith.constant 0 : i32
    %c0_i32_1 = arith.constant 0 : i32
    return %arg1, %c0_i32, %c0_i32_0 : i32, i32, i32
  }
  func.func @transform_7(%arg0: i32, %arg1: i32) -> (i32, i32, i32) {
    %c0_i32 = arith.constant 0 : i32
    %c0_i32_0 = arith.constant 0 : i32
    %c0_i32_1 = arith.constant 0 : i32
    return %arg1, %c0_i32, %c0_i32_0 : i32, i32, i32
  }
  func.func @transform_8(%arg0: i32, %arg1: i32) -> (i32, i32, i32) {
    %c0_i32 = arith.constant 0 : i32
    %c0_i32_0 = arith.constant 0 : i32
    %c0_i32_1 = arith.constant 0 : i32
    return %arg0, %c0_i32, %c0_i32_0 : i32, i32, i32
  }
}

</mosaic_0001>

<bundles_post_ra>
// kernel: tpu_custom_call.1
= control target key start
LH: loop header
LB: loop body
LE: loop exit
PB: predicated region body
PF: predicated region fallthrough
CT: control target
= control target key end

     0   :  { %s2955_s0 = inlined_call_operand.vmem [shape: bf16[2,8,32], index: 0, kind: input, shape index: {}]   ;;  %s2956_s1 = inlined_call_operand.vmem [shape: bf16[2,8,32], index: 1, kind: input, shape index: {}]   ;;  %s2957_s2 = inlined_call_operand.vmem [shape: bf16[2,32,96], index: 2, kind: input, shape index: {}]   ;;  %s2958_s3 = inlined_call_operand.vmem [shape: bf16[2,1,96], index: 3, kind: input, shape index: {}]   ;;  %s2959_s4 = inlined_call_operand.vmem [shape: bf16[2,32,32], index: 4, kind: input, shape index: {}]   ;;  %s2960_s5 = inlined_call_operand.vmem [shape: bf16[2,32,128], index: 5, kind: input, shape index: {}]   ;;  %s2961_s6 = inlined_call_operand.vmem [shape: bf16[2,1,128], index: 6, kind: input, shape index: {}]   ;;  %s2962_s7 = inlined_call_operand.vmem [shape: bf16[2,128,32], index: 7, kind: input, shape index: {}]   ;;  %s2963_s8 = inlined_call_operand.hbm [shape: bf16[2,8,32], index: 8, kind: output, shape index: {}]  }
   0x1   :  { %2964 = sst [smem:[#allocation6_spill]] %s2956_s1 }
   0x2   :  { %13 = vsyncpa [#allocation4], 0  ;;  %s2564_s27 = smov 0   ;;  %s2566_s28 = smov 0  }
   0x3   :  { %s2568_s29 = smov 0  }
   0x4 LB: > { %s28_s9 = sadd.s32 1, %s2498_s28  ;;  %p2068_p1 = scmp.ge.s32.totalorder %s2502_s29, 1  ;;  %s2502_s29 = sphi %s2568_s29, %s19_s29   ;;  %s2498_s28 = sphi %s2566_s28, %s2971_s28   ;;  %s2494_s27 = sphi %s2564_s27, %s2970_s27  }
   0x5   : > { %p29_p0 = scmp.ge.s32.totalorder %s28_s9, 2  ;;  %p341_p2 = scmp.lt.s32.totalorder %s2502_s29, 3 }
   0x7   : > { %s2973_s9 = smov (%p29_p0, %s28_s9), 0  ;;  %p342_p3 = pnand %p2068_p1, %p341_p2 }
   0x8   : > { %p406_p4 = scmp.lt.s32.totalorder (!%p342_p3), %s2494_s27, 1  ;;  %s2965_s1 = sld [smem:[#allocation6_spill]] (!%p342_p3) }
   0x9   : > { %345 = sbr.rel (%p342_p3) target bundleno = 4290 (0x10c2), region = 52  ;;  %p2078_p5 = scmp.ne.s32.totalorder (!%p342_p3), %s2494_s27, 0 }
   0xe   : > { %s2587_s10 = scalar_select %p406_p4, %s2494_s27, 1 }
  0x10   : > { %s2069_s11 = sshll.u32 %s2587_s10, 2  ;;  %s2124_s12 = sshll.u32 %s2587_s10, 4 }
  0x11   : > { %s2594_s15 = scalar_lea.vmem %s2965_s1, %s2069_s11  ;;  %s2599_s18 = scalar_lea.vmem %s2957_s2, %s2124_s12 }
  0x12   : > { %s417_s21 = scalar_lea.vmem %s2958_s3, %s2587_s10  ;;  %s2608_s24 = scalar_lea.vmem %s2959_s4, %s2124_s12 }
  0x13   : > { %s2613_s13 = scalar_lea.vmem %s2960_s5, %s2124_s12  ;;  %s430_s16 = scalar_lea.vmem %s2961_s6, %s2587_s10 }
  0x14   : > { %s2127_s17 = sshll.u32 %s2587_s10, 6  ;;  %441 = sbr.rel (%p2078_p5) target bundleno = 29 (0x1d), region = 56 }
  0x15   : > { %s2623_s19 = scalar_lea.vmem %s2962_s7, %s2127_s17 }
  0x19   : > { %v2133_v0 = vld [vmem:[%s2955_s0] sm:$0xff]   ;;  %vm446_vm0 = vcmask 261120  }
  0x1a   : > { %v2134_v1 = vunpack.c.l.bf16 %v2133_v0  ;;  %v2135_v2 = vunpack.c.h.bf16 %v2133_v0 }
  0x1c   : > { %447 = vst.msk [vmem:[#allocation2] sm:$0xff] %vm446_vm0, %v2134_v1  ;;  %448 = vst.msk [vmem:[#allocation2 + $0x8] sm:$0xff] %vm446_vm0, %v2135_v2 }
  0x1d PF: > { %vm453_vm1 = vcmask 261120   ;;  %v2392_v17 = vld [vmem:[%s2599_s18 + $0x8] sm:$0xff]   ;;  %v2504_v18 = vmov 0.0   ;;  %vm2505_vm2 = vmmov 0   ;;  %v2393_v19 = vld [vmem:[%s2599_s18] sm:$0xff]   ;;  %v481_v26 = vlaneseq  ;;  %s2506_s12 = smov 96  }
  0x1e   : > { %2191 = vmatprep.subr.bf16.mxu1 %v2504_v18  ;;  %2195 = vmatprep.mubr.msk.bf16.mxu1 %vm2505_vm2, %v2504_v18  ;;  %v451_v28 = vld [vmem:[%s2594_s15] sm:$0xf]  ;;  %vm584_vm3 = vcmask 64512   ;;  %s2507_s15 = smov 64   ;;  %s2508_s18 = smov 88   ;;  %vm713_vm5 = vcmask 1043456  }
  0x1f   : > { %2192 = vmatpush3.bf16.msra.mxu1 %v2392_v17  ;;  %2217 = vmatprep.subr.bf16.mxu0 %v2504_v18  ;;  %v2651_v27 = vshrl.u32 %v481_v26, 7  ;;  %v2654_v29 = vunpack.c.l.bf16 %v451_v28  ;;  %v498_v43 = vld [vmem:[%s417_s21] sm:$0x1]  ;;  %v563_v62 = vand.u32 127, %v481_v26  ;;  %s2509_s21 = smov 120   ;;  %s2510_s23 = smov 56  }
  0x20   : > { %2193 = vmatprep.subr.bf16.mxu1 %v2504_v18  ;;  %2219 = vmatprep.mubr.msk.bf16.mxu0 %vm2505_vm2, %v2504_v18  ;;  %v499_v44 = vunpack.c.l.bf16 %v498_v43  ;;  %s2511_s25 = smov 80   ;;  %s2512_s26 = smov 112  }
  0x21   : > { %v2657_v30 = vsub.s32 0, %v2651_v27  ;;  %v489_v34 = vsub.s32 1, %v2651_v27  ;;  %vm2695_vm4 = vcmp.le.s32.totalorder %v563_v62, %v2651_v27  ;;  %s2513_s11 = smov 48   ;;  %s2514_s14 = smov 72  }
  0x22   : > { %s2515_s17 = smov 104   ;;  %s2516_s20 = smov 40  }
  0x23   : > { %v2629_v3 = vld [vmem:[#allocation2] sm:$0xff]  ;;  %v2631_v4 = vld [vmem:[#allocation2 + $0x8] sm:$0xff]  ;;  %2194 = vmatpush3.bf16.msra.mxu1 %v2393_v19  ;;  %v484_v33 = vrot.slane %v2654_v29, %v2657_v30  ;;  %v490_v38 = vrot.slane %v2654_v29, %v489_v34  ;;  %v503_v45 = vrot.slane %v499_v44, %v2657_v30  ;;  %p2119_p6 = scmp.ne.s32.totalorder %s2494_s27, 1 }
  0x24   : > { %v454_v5 = vsel %vm453_vm1, %v2629_v3, 0.0  ;;  %v457_v6 = vsel %vm453_vm1, %v2631_v4, 0.0  ;;  %2199 = vmatprep.subr.bf16.mxu1 %v2504_v18 }
  0x25   : > { %455 = vadd.xlane.f32.xlu0 %v454_v5 }
  0x29   : > { %458 = vadd.xlane.f32.xlu0 %v457_v6 }
  0xae   : > { %v456_v7 = vpop.xlane.xlu0 %455 }
  0xaf   : > { %v461_v8 = vmul.f32 0.03125, %v456_v7 }
  0xb1   : > { %v463_v9 = vsub.f32 %v2629_v3, %v461_v8 }
  0xb2   : > { %v459_v10 = vpop.xlane.xlu0 %458 }
  0xb3   : > { %v462_v11 = vmul.f32 0.03125, %v459_v10  ;;  %v465_v12 = vmul.f32 %v463_v9, %v463_v9 }
  0xb5   : > { %v464_v13 = vsub.f32 %v2631_v4, %v462_v11  ;;  %v467_v14 = vsel %vm453_vm1, %v465_v12, 0.0 }
  0xb6   : > { %468 = vadd.xlane.f32.xlu1 %v467_v14 }
  0xb7   : > { %v466_v15 = vmul.f32 %v464_v13, %v464_v13 }
  0xb9   : > { %v470_v16 = vsel %vm453_vm1, %v466_v15, 0.0 }
  0xba   : > { %471 = vadd.xlane.f32.xlu1 %v470_v16 }
 0x13f   : > { %v469_v20 = vpop.xlane.xlu1 %468 }
 0x140   : > { %v473_v21 = vmul.f32 0.03125, %v469_v20 }
 0x142   : > { %v475_v22 = vadd.f32 1e-05, %v473_v21 }
 0x143   : > { %v472_v23 = vpop.xlane.xlu1 %471 }
 0x144   : > { %2404 = vrsqrt.f32 %v475_v22  ;;  %v474_v24 = vmul.f32 0.03125, %v472_v23 }
 0x146   : > { %v476_v25 = vadd.f32 1e-05, %v474_v24 }
 0x148   : > { %2406 = vrsqrt.f32 %v476_v25 }
 0x151   : > { %v2405_v31 = vpop.eup %2404 }
 0x152   : > { %v479_v32 = vmul.f32 %v2405_v31, %v463_v9 }
 0x154   : > { %v485_v37 = vmul.f32 %v484_v33, %v479_v32 }
 0x155   : > { %v2407_v35 = vpop.eup %2406 }
 0x156   : > { %v480_v36 = vmul.f32 %v2407_v35, %v464_v13  ;;  %v491_v40 = vadd.f32 %v490_v38, %v485_v37 }
 0x158   : > { %v486_v39 = vmul.f32 %v484_v33, %v480_v36 }
 0x15a   : > { %v492_v41 = vadd.f32 %v490_v38, %v486_v39 }
 0x15c   : > { %v493_v42 = vpack.c.bf16 %v492_v41, %v491_v40 }
 0x15e   : > { %2196 = vmatmul.mubr.msk.bf16.vlgmr.msra.gmra.mxu1 %vm453_vm1, %v493_v42 }
 0x15f   : > { %2201 = vmatprep.mubr.msk.bf16.mxu1 %vm2505_vm2, %v2504_v18 }
 0x21e   : > { %v553_v46 = vpop.f32.mrf.mxu1 }
 0x21f   : > { %v554_v47 = vadd.f32 %v553_v46, %v503_v45 }
 0x220   : > { %v2197_v48 = vpop.f32.mrf.mxu1 }
 0x221   : > { %v2672_v49 = vpack.c.bf16 %v554_v47, %v554_v47  ;;  %v569_v56 = vmul.f32 0.35355338, %v554_v47 }
 0x222   : > { %v556_v50 = vpop.f32.mrf.mxu1 }
 0x223   : > { %v557_v51 = vadd.f32 %v556_v50, %v503_v45  ;;  %582 = vrot.lane.b32.xlu0 %v2672_v49, %s2506_s12  ;;  %v2680_v58 = vpack.c.bf16 %v569_v56, %v569_v56 }
 0x224   : > { %v2198_v52 = vpop.f32.mrf.mxu1 }
 0x225   : > { %v2675_v53 = vpack.c.bf16 %v557_v51, %v557_v51  ;;  %v570_v60 = vmul.f32 0.35355338, %v557_v51 }
 0x227   : > { %632 = vrot.lane.b32.xlu1 %v2675_v53, %s2506_s12  ;;  %v2688_v61 = vpack.c.bf16 %v570_v60, %v570_v60 }
 0x295   : > { %v583_v54 = vpop.permute.xlu0 %582 }
 0x296   : > { %v589_v55 = vsel %vm584_vm3, %v583_v54, 0 }
 0x297   : > { %2200 = vmatpush3.bf16.xpose.msra.mxu1 %v589_v55 }
 0x298   : > { %2205 = vmatprep.subr.bf16.mxu1 %v2504_v18 }
 0x299   : > { %v633_v57 = vpop.permute.xlu1 %632 }
 0x29a   : > { %v638_v59 = vsel %vm584_vm3, %v633_v57, 0 }
 0x29e   : > { %2202 = vmatmul.mubr.msk.bf16.vlgmr.msra.gmra.mxu1 %vm584_vm3, %v2680_v58 }
 0x29f   : > { %2206 = vmatpush3.bf16.xpose.msra.mxu1 %v638_v59  ;;  %2207 = vmatprep.mubr.msk.bf16.mxu1 %vm2505_vm2, %v2504_v18 }
 0x2a0   : > { %2211 = vmatprep.subr.bf16.mxu1 %v2504_v18 }
 0x2a6   : > { %2208 = vmatmul.mubr.msk.bf16.vlgmr.msra.gmra.mxu1 %vm584_vm3, %v2688_v61 }
 0x2a7   : > { %2213 = vmatprep.mubr.msk.bf16.mxu1 %vm2505_vm2, %v2504_v18 }
 0x35e   : > { %v625_v0 = vpop.f32.mrf.mxu1 }
 0x35f   : > { %v682_v1 = vsel %vm2695_vm4, %v625_v0, -1e+30 }
 0x360   : > { %v2203_v2 = vpop.f32.mrf.mxu1  ;;  %v684_v5 = vsel %vm584_vm3, %v682_v1, -inf }
 0x361   : > { %685 = vmax.xlane.f32.xlu1 %v684_v5 }
 0x362   : > { %v628_v6 = vpop.f32.mrf.mxu1 }
 0x364   : > { %v2204_v7 = vpop.f32.mrf.mxu1 }
 0x366   : > { %v674_v8 = vpop.f32.mrf.mxu1 }
 0x367   : > { %v683_v9 = vsel %vm2695_vm4, %v674_v8, -1e+30 }
 0x368   : > { %v2209_v10 = vpop.f32.mrf.mxu1  ;;  %v687_v11 = vsel %vm584_vm3, %v683_v9, -inf }
 0x369   : > { %688 = vmax.xlane.f32.xlu0 %v687_v11 }
 0x36a   : > { %v677_v12 = vpop.f32.mrf.mxu1 }
 0x36c   : > { %v2210_v13 = vpop.f32.mrf.mxu1 }
 0x372   : > { %757 = vrot.lane.b32.xlu1 %v2675_v53, %s2507_s15 }
 0x376   : > { %808 = vrot.lane.b32.xlu1 %v2672_v49, %s2508_s18 }
 0x3ea   : > { %v686_v14 = vpop.xlane.xlu1 %685 }
 0x3eb   : > { %v690_v15 = vsub.f32 %v682_v1, %v686_v14 }
 0x3ed   : > { %v692_v16 = vmul.f32 1.442695, %v690_v15 }
 0x3ee   : > { %v758_v17 = vpop.permute.xlu1 %757 }
 0x3ef   : > { %2408 = vpow2.f32 %v692_v16  ;;  %v763_v19 = vsel %vm713_vm5, %v758_v17, 0 }
 0x3f0   : > { %2218 = vmatpush3.bf16.msra.mxu0 %v763_v19 }
 0x3f1   : > { %2229 = vmatprep.subr.bf16.mxu0 %v2504_v18 }
 0x3f2   : > { %v689_v20 = vpop.xlane.xlu0 %688  ;;  %v809_v31 = vpop.permute.xlu1 %808 }
 0x3f3   : > { %v691_v21 = vsub.f32 %v683_v9, %v689_v20  ;;  %v814_v38 = vsel %vm584_vm3, %v809_v31, 0 }
 0x3f5   : > { %v694_v22 = vmul.f32 1.442695, %v691_v21 }
 0x3f7   : > { %2410 = vpow2.f32 %v694_v22 }
 0x3fc   : > { %v2409_v23 = vpop.eup %2408 }
 0x3fd   : > { %v696_v24 = vsel %vm584_vm3, %v2409_v23, 0.0 }
 0x3fe   : > { %697 = vadd.xlane.f32.xlu0 %v696_v24 }
 0x404   : > { %v2411_v25 = vpop.eup %2410 }
 0x405   : > { %v699_v26 = vsel %vm584_vm3, %v2411_v25, 0.0 }
 0x406   : > { %700 = vadd.xlane.f32.xlu1 %v699_v26 }
 0x414   : > { %708 = vrot.lane.b32.xlu0 %v2672_v49, %s2507_s15 }
 0x417   : > { %858 = vrot.lane.b32.xlu1 %v2675_v53, %s2508_s18 }
 0x418   : > { %806 = vrot.lane.b32.xlu0 %v2680_v58, %s2509_s21 }
 0x41b   : > { %856 = vrot.lane.b32.xlu1 %v2688_v61, %s2509_s21 }
 0x487   : > { %v698_v28 = vpop.xlane.xlu0 %697 }
 0x488   : > { %2412 = vrcp.f32 %v698_v28 }
 0x48b   : > { %v709_v32 = vpop.permute.xlu0 %708 }
 0x48c   : > { %v715_v33 = vsel %vm713_vm5, %v709_v32, 0 }
 0x48d   : > { %2212 = vmatpush3.bf16.msra.mxu1 %v715_v33 }
 0x48e   : > { %2223 = vmatprep.subr.bf16.mxu1 %v2504_v18 }
 0x48f   : > { %v701_v34 = vpop.xlane.xlu1 %700  ;;  %v807_v43 = vpop.permute.xlu0 %806 }
 0x490   : > { %2414 = vrcp.f32 %v701_v34  ;;  %v565_v34 = vld [vmem:[%s2608_s24] sm:$0xf] }
 0x493   : > { %v859_v41 = vpop.permute.xlu1 %858 }
 0x494   : > { %v864_v44 = vsel %vm584_vm3, %v859_v41, 0 }
 0x495   : > { %v2413_v35 = vpop.eup %2412 }
 0x496   : > { %v704_v36 = vmul.f32 %v2413_v35, %v2409_v23 }
 0x497   : > { %v857_v45 = vpop.permute.xlu1 %856 }
 0x498   : > { %v706_v37 = vpack.c.bf16 %v704_v36, %v704_v36 }
 0x49a   : > { %2214 = vmatmul.mubr.msk.bf16.vlgmr.msra.gmra.mxu1 %vm584_vm3, %v706_v37  ;;  %v1080_v37 = vsel %vm713_vm5, %v565_v34, 0 }
 0x49b   : > { %2224 = vmatpush3.bf16.xpose.msra.mxu1 %v814_v38  ;;  %2225 = vmatprep.mubr.msk.bf16.mxu1 %vm2505_vm2, %v2504_v18 }
 0x49c   : > { %2235 = vmatprep.subr.bf16.mxu1 %v2504_v18 }
 0x49d   : > { %v2415_v39 = vpop.eup %2414 }
 0x49e   : > { %v705_v40 = vmul.f32 %v2415_v39, %v2411_v25 }
 0x4a0   : > { %v707_v42 = vpack.c.bf16 %v705_v40, %v705_v40 }
 0x4a2   : > { %2220 = vmatmul.mubr.msk.bf16.vlgmr.msra.gmra.mxu0 %vm584_vm3, %v707_v42  ;;  %2226 = vmatmul.mubr.msk.bf16.vlgmr.msra.gmra.mxu1 %vm584_vm3, %v807_v43  ;;  %v566_v42 = vld [vmem:[%s2608_s24 + $0x4] sm:$0xf] }
 0x4a3   : > { %2230 = vmatpush3.bf16.xpose.msra.mxu0 %v864_v44  ;;  %2231 = vmatprep.mubr.msk.bf16.mxu0 %vm2505_vm2, %v2504_v18  ;;  %v1033_v43 = vsel %vm713_vm5, %v566_v42, 0 }
 0x4a4   : > { %2241 = vmatprep.subr.bf16.mxu0 %v2504_v18  ;;  %2237 = vmatprep.mubr.msk.bf16.mxu1 %vm2505_vm2, %v2504_v18 }
 0x4aa   : > { %2232 = vmatmul.mubr.msk.bf16.vlgmr.msra.gmra.mxu0 %vm584_vm3, %v857_v45 }
 0x4ab   : > { %2243 = vmatprep.mubr.msk.bf16.mxu0 %vm2505_vm2, %v2504_v18 }
 0x55a   : > { %v2735_v46 = vpop.f32.mrf.mxu1 }
 0x55c   : > { %v2215_v47 = vpop.f32.mrf.mxu1 }
 0x55e   : > { %v754_v48 = vpop.f32.mrf.mxu1 }
 0x560   : > { %v2216_v50 = vpop.f32.mrf.mxu1 }
 0x562   : > { %v2737_v51 = vpop.f32.mrf.mxu0  ;;  %v850_v52 = vpop.f32.mrf.mxu1 }
 0x563   : > { %v805_v54 = vpack.c.bf16 %v2737_v51, %v2735_v46  ;;  %v906_v55 = vsel %vm2695_vm4, %v850_v52, -1e+30 }
 0x564   : > { %v2221_v56 = vpop.f32.mrf.mxu0  ;;  %v2227_v57 = vpop.f32.mrf.mxu1  ;;  %v908_v59 = vsel %vm584_vm3, %v906_v55, -inf }
 0x565   : > { %909 = vmax.xlane.f32.xlu0 %v908_v59 }
 0x566   : > { %v802_v60 = vpop.f32.mrf.mxu0  ;;  %v853_v62 = vpop.f32.mrf.mxu1 }
 0x568   : > { %v2222_v0 = vpop.f32.mrf.mxu0  ;;  %v2228_v1 = vpop.f32.mrf.mxu1 }
 0x56a   : > { %v900_v2 = vpop.f32.mrf.mxu0 }
 0x56b   : > { %v907_v5 = vsel %vm2695_vm4, %v900_v2, -1e+30 }
 0x56c   : > { %v2233_v6 = vpop.f32.mrf.mxu0  ;;  %v911_v7 = vsel %vm584_vm3, %v907_v5, -inf }
 0x56d   : > { %912 = vmax.xlane.f32.xlu1 %v911_v7 }
 0x56e   : > { %v903_v8 = vpop.f32.mrf.mxu0 }
 0x570   : > { %v2234_v9 = vpop.f32.mrf.mxu0 }
 0x57e   : > { %980 = vrot.lane.b32.xlu1 %v2675_v53, %s2510_s23 }
 0x582   : > { %1125 = vrot.lane.b32.xlu1 %v2672_v49, %s2511_s25 }
 0x586   : > { %1175 = vrot.lane.b32.xlu1 %v2675_v53, %s2511_s25 }
 0x58a   : > { %1173 = vrot.lane.b32.xlu1 %v2688_v61, %s2512_s26 }
 0x5ee   : > { %v910_v10 = vpop.xlane.xlu0 %909 }
 0x5ef   : > { %v914_v11 = vsub.f32 %v906_v55, %v910_v10 }
 0x5f1   : > { %v916_v12 = vmul.f32 1.442695, %v914_v11 }
 0x5f3   : > { %2416 = vpow2.f32 %v916_v12 }
 0x5f6   : > { %v913_v13 = vpop.xlane.xlu1 %912 }
 0x5f7   : > { %v915_v14 = vsub.f32 %v907_v5, %v913_v13 }
 0x5f9   : > { %v918_v15 = vmul.f32 1.442695, %v915_v14 }
 0x5fa   : > { %v981_v16 = vpop.permute.xlu1 %980 }
 0x5fb   : > { %2418 = vpow2.f32 %v918_v15  ;;  %v986_v17 = vsel %vm713_vm5, %v981_v16, 0 }
 0x5fc   : > { %2242 = vmatpush3.bf16.msra.mxu0 %v986_v17 }
 0x5fd   : > { %2253 = vmatprep.subr.bf16.mxu0 %v2504_v18 }
 0x5fe   : > { %v1126_v38 = vpop.permute.xlu1 %1125 }
 0x5ff   : > { %v1131_v52 = vsel %vm584_vm3, %v1126_v38, 0 }
 0x600   : > { %v2417_v19 = vpop.eup %2416 }
 0x601   : > { %v920_v20 = vsel %vm584_vm3, %v2417_v19, 0.0 }
 0x602   : > { %921 = vadd.xlane.f32.xlu0 %v920_v20  ;;  %v1176_v39 = vpop.permute.xlu1 %1175 }
 0x603   : > { %v1181_v40 = vsel %vm584_vm3, %v1176_v39, 0 }
 0x606   : > { %v1174_v41 = vpop.permute.xlu1 %1173 }
 0x608   : > { %v2419_v21 = vpop.eup %2418 }
 0x609   : > { %v923_v22 = vsel %vm584_vm3, %v2419_v21, 0.0 }
 0x60a   : > { %924 = vadd.xlane.f32.xlu0 %v923_v22 }
 0x620   : > { %932 = vrot.lane.b32.xlu0 %v2672_v49, %s2510_s23 }
 0x624   : > { %1123 = vrot.lane.b32.xlu0 %v2680_v58, %s2512_s26 }
 0x68b   : > { %v922_v23 = vpop.xlane.xlu0 %921 }
 0x68c   : > { %2420 = vrcp.f32 %v922_v23 }
 0x693   : > { %v925_v24 = vpop.xlane.xlu0 %924 }
 0x694   : > { %2422 = vrcp.f32 %v925_v24 }
 0x697   : > { %v933_v25 = vpop.permute.xlu0 %932 }
 0x698   : > { %v938_v26 = vsel %vm713_vm5, %v933_v25, 0 }
 0x699   : > { %v2421_v28 = vpop.eup %2420  ;;  %2236 = vmatpush3.bf16.msra.mxu1 %v938_v26 }
 0x69a   : > { %v928_v31 = vmul.f32 %v2421_v28, %v2417_v19  ;;  %2247 = vmatprep.subr.bf16.mxu1 %v2504_v18 }
 0x69b   : > { %v1124_v57 = vpop.permute.xlu0 %1123 }
 0x69c   : > { %v930_v32 = vpack.c.bf16 %v928_v31, %v928_v31 }
 0x69e   : > { %2238 = vmatmul.mubr.msk.bf16.vlgmr.msra.gmra.mxu1 %vm584_vm3, %v930_v32 }
 0x69f   : > { %2249 = vmatprep.mubr.msk.bf16.mxu1 %vm2505_vm2, %v2504_v18  ;;  %2248 = vmatpush3.bf16.msra.mxu1 %v1033_v43 }
 0x6a0   : > { %2259 = vmatprep.subr.bf16.mxu1 %v2504_v18 }
 0x6a1   : > { %v2423_v33 = vpop.eup %2422 }
 0x6a2   : > { %v929_v35 = vmul.f32 %v2423_v33, %v2419_v21 }
 0x6a4   : > { %v931_v36 = vpack.c.bf16 %v929_v35, %v929_v35 }
 0x6a6   : > { %2244 = vmatmul.mubr.msk.bf16.vlgmr.msra.gmra.mxu0 %vm584_vm3, %v931_v36 }
 0x6a7   : > { %2254 = vmatpush3.bf16.msra.mxu0 %v1080_v37  ;;  %2255 = vmatprep.mubr.msk.bf16.mxu0 %vm2505_vm2, %v2504_v18 }
 0x6a8   : > { %2265 = vmatprep.subr.bf16.mxu0 %v2504_v18 }
 0x6ae   : > { %2256 = vmatmul.mubr.msk.bf16.vlgmr.msra.gmra.mxu0 %vm584_vm3, %v805_v54 }
 0x6af   : > { %2266 = vmatpush3.bf16.xpose.msra.mxu0 %v1181_v40  ;;  %2267 = vmatprep.mubr.msk.bf16.mxu0 %vm2505_vm2, %v2504_v18 }
 0x6b0   : > { %2277 = vmatprep.subr.bf16.mxu0 %v2504_v18 }
 0x6b6   : > { %2268 = vmatmul.mubr.msk.bf16.vlgmr.msra.gmra.mxu0 %vm584_vm3, %v1174_v41 }
 0x6b7   : > { %2279 = vmatprep.mubr.msk.bf16.mxu0 %vm2505_vm2, %v2504_v18 }
 0x75e   : > { %v974_v44 = vpop.f32.mrf.mxu1 }
 0x760   : > { %v2239_v45 = vpop.f32.mrf.mxu1 }
 0x762   : > { %v977_v46 = vpop.f32.mrf.mxu1 }
 0x764   : > { %v2240_v47 = vpop.f32.mrf.mxu1 }
 0x766   : > { %v1022_v48 = vpop.f32.mrf.mxu0 }
 0x767   : > { %v1028_v50 = vpack.c.bf16 %v1022_v48, %v974_v44 }
 0x768   : > { %v2245_v51 = vpop.f32.mrf.mxu0 }
 0x769   : > { %2250 = vmatmul.mubr.msk.bf16.vlgmr.msra.gmra.mxu1 %vm584_vm3, %v1028_v50  ;;  %v567_v50 = vld [vmem:[%s2608_s24 + $0x8] sm:$0xf] }
 0x76a   : > { %2260 = vmatpush3.bf16.xpose.msra.mxu1 %v1131_v52  ;;  %v1025_v54 = vpop.f32.mrf.mxu0  ;;  %2261 = vmatprep.mubr.msk.bf16.mxu1 %vm2505_vm2, %v2504_v18  ;;  %v1350_v51 = vsel %vm713_vm5, %v567_v50, 0 }
 0x76b   : > { %2271 = vmatprep.subr.bf16.mxu1 %v2504_v18 }
 0x76c   : > { %v2246_v55 = vpop.f32.mrf.mxu0 }
 0x76e   : > { %v2787_v56 = vpop.f32.mrf.mxu0 }
 0x770   : > { %v2257_v59 = vpop.f32.mrf.mxu0 }
 0x771   : > { %2262 = vmatmul.mubr.msk.bf16.vlgmr.msra.gmra.mxu1 %vm584_vm3, %v1124_v57 }
 0x772   : > { %v2790_v60 = vpop.f32.mrf.mxu0  ;;  %2273 = vmatprep.mubr.msk.bf16.mxu1 %vm2505_vm2, %v2504_v18 }
 0x774   : > { %v2258_v62 = vpop.f32.mrf.mxu0 }
 0x776   : > { %v1217_v0 = vpop.f32.mrf.mxu0 }
 0x777   : > { %v1224_v1 = vsel %vm2695_vm4, %v1217_v0, -1e+30 }
 0x778   : > { %v2269_v2 = vpop.f32.mrf.mxu0  ;;  %v1228_v5 = vsel %vm584_vm3, %v1224_v1, -inf }
 0x779   : > { %1229 = vmax.xlane.f32.xlu1 %v1228_v5 }
 0x77a   : > { %v1220_v6 = vpop.f32.mrf.mxu0 }
 0x77c   : > { %v2270_v7 = vpop.f32.mrf.mxu0 }
 0x78a   : > { %1297 = vrot.lane.b32.xlu1 %v2675_v53, %s2513_s11 }
 0x78e   : > { %1397 = vrot.lane.b32.xlu1 %v2672_v49, %s2514_s14 }
 0x792   : > { %1447 = vrot.lane.b32.xlu1 %v2675_v53, %s2514_s14 }
 0x796   : > { %1445 = vrot.lane.b32.xlu1 %v2688_v61, %s2515_s17 }
 0x802   : > { %v1230_v8 = vpop.xlane.xlu1 %1229 }
 0x803   : > { %v1232_v11 = vsub.f32 %v1224_v1, %v1230_v8 }
 0x805   : > { %v1235_v12 = vmul.f32 1.442695, %v1232_v11 }
 0x806   : > { %v1298_v9 = vpop.permute.xlu1 %1297 }
 0x807   : > { %v1303_v10 = vsel %vm713_vm5, %v1298_v9, 0  ;;  %2424 = vpow2.f32 %v1235_v12 }
 0x808   : > { %2278 = vmatpush3.bf16.msra.mxu0 %v1303_v10 }
 0x809   : > { %2289 = vmatprep.subr.bf16.mxu0 %v2504_v18 }
 0x80a   : > { %v1398_v36 = vpop.permute.xlu1 %1397 }
 0x80b   : > { %v1403_v38 = vsel %vm584_vm3, %v1398_v36, 0 }
 0x80e   : > { %v1448_v0 = vpop.permute.xlu1 %1447 }
 0x80f   : > { %v1453_v6 = vsel %vm584_vm3, %v1448_v0, 0 }
 0x812   : > { %v1446_v9 = vpop.permute.xlu1 %1445 }
 0x814   : > { %v2425_v21 = vpop.eup %2424 }
 0x815   : > { %v1240_v24 = vsel %vm584_vm3, %v2425_v21, 0.0 }
 0x829   : > { %v2805_v13 = vpop.f32.mrf.mxu1 }
 0x82b   : > { %v2251_v14 = vpop.f32.mrf.mxu1 }
 0x82d   : > { %v2807_v15 = vpop.f32.mrf.mxu1 }
 0x82f   : > { %v2252_v16 = vpop.f32.mrf.mxu1 }
 0x831   : > { %v1167_v17 = vpop.f32.mrf.mxu1 }
 0x832   : > { %v1223_v61 = vsel %vm2695_vm4, %v1167_v17, -1e+30  ;;  %v1117_v17 = vadd.f32 %v2787_v56, %v2805_v13 }
 0x833   : > { %v2263_v19 = vpop.f32.mrf.mxu1  ;;  %v1225_v20 = vsel %vm584_vm3, %v1223_v61, -inf }
 0x834   : > { %1226 = vmax.xlane.f32.xlu0 %v1225_v20 }
 0x835   : > { %v1170_v22 = vpop.f32.mrf.mxu1 }
 0x837   : > { %v2264_v23 = vpop.f32.mrf.mxu1 }
 0x838   : > { %1241 = vadd.xlane.f32.xlu0 %v1240_v24 }
 0x8bd   : > { %v1227_v25 = vpop.xlane.xlu0 %1226 }
 0x8be   : > { %v1231_v26 = vsub.f32 %v1223_v61, %v1227_v25 }
 0x8c0   : > { %v1233_v28 = vmul.f32 1.442695, %v1231_v26 }
 0x8c1   : > { %v1242_v31 = vpop.xlane.xlu0 %1241 }
 0x8c2   : > { %2426 = vpow2.f32 %v1233_v28 }
 0x8c3   : > { %2428 = vrcp.f32 %v1242_v31 }
 0x8cf   : > { %v2427_v32 = vpop.eup %2426 }
 0x8d0   : > { %v2429_v33 = vpop.eup %2428  ;;  %v1237_v34 = vsel %vm584_vm3, %v2427_v32, 0.0 }
 0x8d1   : > { %1238 = vadd.xlane.f32.xlu0 %v1237_v34  ;;  %v1246_v35 = vmul.f32 %v2429_v33, %v2425_v21  ;;  %v1120_v21 = vadd.f32 %v2790_v60, %v2807_v15 }
 0x8d3   : > { %v1248_v37 = vpack.c.bf16 %v1246_v35, %v1246_v35 }
 0x8d5   : > { %2280 = vmatmul.mubr.msk.bf16.vlgmr.msra.gmra.mxu0 %vm584_vm3, %v1248_v37 }
 0x8d6   : > { %2290 = vmatpush3.bf16.xpose.msra.mxu0 %v1403_v38  ;;  %2291 = vmatprep.mubr.msk.bf16.mxu0 %vm2505_vm2, %v2504_v18 }
 0x8d7   : > { %2301 = vmatprep.subr.bf16.mxu0 %v2504_v18 }
 0x8e7   : > { %1249 = vrot.lane.b32.xlu0 %v2672_v49, %s2513_s11 }
 0x8eb   : > { %1395 = vrot.lane.b32.xlu0 %v2680_v58, %s2515_s17 }
 0x95a   : > { %v1239_v39 = vpop.xlane.xlu0 %1238 }
 0x95b   : > { %2430 = vrcp.f32 %v1239_v39 }
 0x95e   : > { %v1250_v40 = vpop.permute.xlu0 %1249 }
 0x95f   : > { %v1255_v41 = vsel %vm713_vm5, %v1250_v40, 0 }
 0x960   : > { %2272 = vmatpush3.bf16.msra.mxu1 %v1255_v41 }
 0x961   : > { %2283 = vmatprep.subr.bf16.mxu1 %v2504_v18 }
 0x962   : > { %v1396_v42 = vpop.permute.xlu0 %1395 }
 0x963   : > { %2292 = vmatmul.mubr.msk.bf16.vlgmr.msra.gmra.mxu0 %vm584_vm3, %v1396_v42 }
 0x964   : > { %2303 = vmatprep.mubr.msk.bf16.mxu0 %vm2505_vm2, %v2504_v18 }
 0x968   : > { %v2431_v43 = vpop.eup %2430 }
 0x969   : > { %v1245_v44 = vmul.f32 %v2431_v43, %v2427_v32 }
 0x96b   : > { %v1247_v45 = vpack.c.bf16 %v1245_v44, %v1245_v44  ;;  %v568_v44 = vld [vmem:[%s2608_s24 + $0xc] sm:$0xf] }
 0x96d   : > { %2274 = vmatmul.mubr.msk.bf16.vlgmr.msra.gmra.mxu1 %vm584_vm3, %v1247_v45  ;;  %v1622_v45 = vsel %vm713_vm5, %v568_v44, 0  ;;  %v2400_v44 = vld [vmem:[%s2623_s19 + $0x18] sm:$0xff]  }
 0x96e   : > { %2285 = vmatprep.mubr.msk.bf16.mxu1 %vm2505_vm2, %v2504_v18  ;;  %2284 = vmatpush3.bf16.msra.mxu1 %v1350_v51 }
 0x96f   : > { %2295 = vmatprep.subr.bf16.mxu1 %v2504_v18 }
 0x995   : > { %v1339_v58 = vpop.f32.mrf.mxu0 }
 0x997   : > { %v2281_v46 = vpop.f32.mrf.mxu0 }
 0x999   : > { %v1342_v47 = vpop.f32.mrf.mxu0 }
 0x99b   : > { %v2282_v48 = vpop.f32.mrf.mxu0 }
 0xa23   : > { %v1439_v52 = vpop.f32.mrf.mxu0 }
 0xa24   : > { %v1495_v54 = vsel %vm2695_vm4, %v1439_v52, -1e+30 }
 0xa25   : > { %v2293_v55 = vpop.f32.mrf.mxu0  ;;  %v1497_v57 = vsel %vm584_vm3, %v1495_v54, -inf }
 0xa26   : > { %1498 = vmax.xlane.f32.xlu0 %v1497_v57  ;;  %v1671_v57 = vsub.s32 4, %v2651_v27 }
 0xa27   : > { %v1442_v59 = vpop.f32.mrf.mxu0 }
 0xa28   : > { %v1672_v0 = vrot.slane %v2654_v29, %v1671_v57 }
 0xa29   : > { %v2294_v62 = vpop.f32.mrf.mxu0 }
 0xa2d   : > { %v1291_v1 = vpop.f32.mrf.mxu1 }
 0xa2e   : > { %v1345_v2 = vpack.c.bf16 %v1339_v58, %v1291_v1 }
 0xa2f   : > { %v2275_v5 = vpop.f32.mrf.mxu1 }
 0xa30   : > { %2286 = vmatmul.mubr.msk.bf16.vlgmr.msra.gmra.mxu1 %vm584_vm3, %v1345_v2 }
 0xa31   : > { %2296 = vmatpush3.bf16.xpose.msra.mxu1 %v1453_v6  ;;  %v1294_v7 = vpop.f32.mrf.mxu1  ;;  %2297 = vmatprep.mubr.msk.bf16.mxu1 %vm2505_vm2, %v2504_v18 }
 0xa32   : > { %2307 = vmatprep.subr.bf16.mxu1 %v2504_v18 }
 0xa33   : > { %v2276_v8 = vpop.f32.mrf.mxu1 }
 0xa38   : > { %2298 = vmatmul.mubr.msk.bf16.vlgmr.msra.gmra.mxu1 %vm584_vm3, %v1446_v9 }
 0xa39   : > { %2309 = vmatprep.mubr.msk.bf16.mxu1 %vm2505_vm2, %v2504_v18 }
 0xaaf   : > { %v1499_v10 = vpop.xlane.xlu0 %1498 }
 0xab0   : > { %v1503_v11 = vsub.f32 %v1495_v54, %v1499_v10 }
 0xab2   : > { %v1505_v12 = vmul.f32 1.442695, %v1503_v11 }
 0xab4   : > { %2432 = vpow2.f32 %v1505_v12 }
 0xac1   : > { %v2433_v14 = vpop.eup %2432 }
 0xac2   : > { %v1509_v16 = vsel %vm584_vm3, %v2433_v14, 0.0 }
 0xac3   : > { %1510 = vadd.xlane.f32.xlu0 %v1509_v16 }
 0xaf0   : > { %v1386_v61 = vpop.f32.mrf.mxu1 }
 0xaf1   : > { %v1393_v19 = vadd.f32 %v1386_v61, %v1117_v17 }
 0xaf2   : > { %v2287_v20 = vpop.f32.mrf.mxu1 }
 0xaf4   : > { %v1389_v22 = vpop.f32.mrf.mxu1 }
 0xaf5   : > { %v2850_v23 = vadd.f32 %v1389_v22, %v1120_v21 }
 0xaf6   : > { %v2288_v24 = vpop.f32.mrf.mxu1 }
 0xaf7   : > { %v2395_v24 = vld [vmem:[%s2613_s13] sm:$0xff]  }
 0xaf8   : > { %v1489_v25 = vpop.f32.mrf.mxu1 }
 0xaf9   : > { %v1496_v26 = vsel %vm2695_vm4, %v1489_v25, -1e+30 }
 0xafa   : > { %v2299_v28 = vpop.f32.mrf.mxu1  ;;  %v1500_v31 = vsel %vm584_vm3, %v1496_v26, -inf }
 0xafb   : > { %1501 = vmax.xlane.f32.xlu1 %v1500_v31 }
 0xafc   : > { %v1492_v32 = vpop.f32.mrf.mxu1 }
 0xafe   : > { %v2300_v56 = vpop.f32.mrf.mxu1 }
 0xb0c   : > { %1569 = vrot.lane.b32.xlu1 %v2675_v53, %s2516_s20 }
 0xb4c   : > { %v1511_v36 = vpop.xlane.xlu0 %1510 }
 0xb84   : > { %v1502_v13 = vpop.xlane.xlu1 %1501 }
 0xb85   : > { %v1504_v33 = vsub.f32 %v1496_v26, %v1502_v13  ;;  %v1703_v13 = vsub.s32 2, %v2651_v27 }
 0xb87   : > { %v1507_v60 = vmul.f32 1.442695, %v1504_v33 }
 0xb88   : > { %v1570_v15 = vpop.permute.xlu1 %1569 }
 0xb89   : > { %2434 = vpow2.f32 %v1507_v60  ;;  %v1575_v34 = vsel %vm713_vm5, %v1570_v15, 0  ;;  %v1704_v15 = vrot.slane %v2654_v29, %v1703_v13 }
 0xb8a   : > { %2308 = vmatpush3.bf16.msra.mxu1 %v1575_v34  ;;  %2436 = vrcp.f32 %v1511_v36  ;;  %v1709_v34 = vsub.s32 3, %v2651_v27 }
 0xb8b   : > { %2319 = vmatprep.subr.bf16.mxu1 %v2504_v18 }
 0xb96   : > { %v2435_v63 = vpop.eup %2434 }
 0xb97   : > { %v1512_v35 = vsel %vm584_vm3, %v2435_v63, 0.0  ;;  %v2437_v37 = vpop.eup %2436 }
 0xb98   : > { %1513 = vadd.xlane.f32.xlu0 %v1512_v35  ;;  %v1517_v38 = vmul.f32 %v2437_v37, %v2433_v14  ;;  %v1710_v37 = vrot.slane %v2654_v29, %v1709_v34 }
 0xb9a   : > { %v1519_v41 = vpack.c.bf16 %v1517_v38, %v1517_v38 }
 0xbae   : > { %1521 = vrot.lane.b32.xlu0 %v2672_v49, %s2516_s20 }
 0xc21   : > { %v1514_v53 = vpop.xlane.xlu0 %1513 }
 0xc22   : > { %2438 = vrcp.f32 %v1514_v53 }
 0xc25   : > { %v1522_v39 = vpop.permute.xlu0 %1521 }
 0xc26   : > { %v1527_v40 = vsel %vm713_vm5, %v1522_v39, 0 }
 0xc27   : > { %2302 = vmatpush3.bf16.msra.mxu0 %v1527_v40 }
 0xc28   : > { %2313 = vmatprep.subr.bf16.mxu0 %v2504_v18 }
 0xc2a   : > { %2304 = vmatmul.mubr.msk.bf16.vlgmr.msra.gmra.mxu0 %vm584_vm3, %v1519_v41  ;;  %v2396_v41 = vld [vmem:[%s2623_s19 + $0x38] sm:$0xff]  }
 0xc2b   : > { %2315 = vmatprep.mubr.msk.bf16.mxu0 %vm2505_vm2, %v2504_v18  ;;  %2314 = vmatpush3.bf16.msra.mxu0 %v1622_v45  ;;  %v2401_v45 = vld [vmem:[%s2623_s19 + $0x10] sm:$0xff]  }
 0xc2c   : > { %2327 = vmatprep.subr.bf16.mxu0 %v2504_v18 }
 0xc2f   : > { %v2439_v49 = vpop.eup %2438 }
 0xc30   : > { %v1518_v42 = vmul.f32 %v2439_v49, %v2435_v63  ;;  %v2397_v49 = vld [vmem:[%s2623_s19 + $0x30] sm:$0xff]  }
 0xc32   : > { %v1520_v43 = vpack.c.bf16 %v1518_v42, %v1518_v42  ;;  %v2398_v42 = vld [vmem:[%s2623_s19 + $0x28] sm:$0xff]  }
 0xc34   : > { %2310 = vmatmul.mubr.msk.bf16.vlgmr.msra.gmra.mxu1 %vm584_vm3, %v1520_v43  ;;  %v2399_v43 = vld [vmem:[%s2623_s19 + $0x20] sm:$0xff]  }
 0xc35   : > { %2323 = vmatprep.mubr.msk.bf16.mxu1 %vm2505_vm2, %v2504_v18 }
 0xcea   : > { %v1563_v58 = vpop.f32.mrf.mxu0 }
 0xcec   : > { %v2305_v46 = vpop.f32.mrf.mxu0 }
 0xced   : > { %v2403_v46 = vld [vmem:[%s2623_s19] sm:$0xff]  }
 0xcee   : > { %v1566_v47 = vpop.f32.mrf.mxu0 }
 0xcef   : > { %v1718_v47 = vld [vmem:[%s430_s16] sm:$0x1] }
 0xcf0   : > { %v2306_v48 = vpop.f32.mrf.mxu0 }
 0xcf1   : > { %v1719_v48 = vunpack.c.l.bf16 %v1718_v47 }
 0xcf4   : > { %v1611_v50 = vpop.f32.mrf.mxu1 }
 0xcf5   : > { %v1617_v51 = vpack.c.bf16 %v1611_v50, %v1563_v58  ;;  %v2402_v58 = vld [vmem:[%s2623_s19 + $0x8] sm:$0xff]   ;;  %v1723_v50 = vrot.slane %v1719_v48, %v2657_v30 }
 0xcf6   : > { %v2311_v52 = vpop.f32.mrf.mxu1 }
 0xcf7   : > { %2316 = vmatmul.mubr.msk.bf16.vlgmr.msra.gmra.mxu0 %vm584_vm3, %v1617_v51 }
 0xcf8   : > { %v1614_v54 = vpop.f32.mrf.mxu1  ;;  %2343 = vmatprep.mubr.msk.bf16.mxu0 %vm2505_vm2, %v2504_v18  ;;  %2328 = vmatpush3.bf16.msra.mxu0 %v2396_v41 }
 0xcf9   : > { %2329 = vmatprep.subr.bf16.mxu0 %v2504_v18 }
 0xcfa   : > { %v2312_v55 = vpop.f32.mrf.mxu1 }
 0xcfc   : > { %2330 = vmatpush3.bf16.msra.mxu0 %v2397_v49 }
 0xcfd   : > { %2331 = vmatprep.subr.bf16.mxu0 %v2504_v18 }
 0xd00   : > { %2332 = vmatpush3.bf16.msra.mxu0 %v2398_v42 }
 0xd01   : > { %2333 = vmatprep.subr.bf16.mxu0 %v2504_v18 }
 0xd04   : > { %2334 = vmatpush3.bf16.msra.mxu0 %v2399_v43 }
 0xd05   : > { %2335 = vmatprep.subr.bf16.mxu0 %v2504_v18 }
 0xd08   : > { %2336 = vmatpush3.bf16.msra.mxu0 %v2400_v44 }
 0xd09   : > { %2337 = vmatprep.subr.bf16.mxu0 %v2504_v18 }
 0xd0c   : > { %2338 = vmatpush3.bf16.msra.mxu0 %v2401_v45 }
 0xd0d   : > { %2339 = vmatprep.subr.bf16.mxu0 %v2504_v18 }
 0xd10   : > { %2340 = vmatpush3.bf16.msra.mxu0 %v2402_v58 }
 0xd11   : > { %2341 = vmatprep.subr.bf16.mxu0 %v2504_v18 }
 0xd14   : > { %2342 = vmatpush3.bf16.msra.mxu0 %v2403_v46 }
 0xdb7   : > { %v1658_v59 = vpop.f32.mrf.mxu0 }
 0xdb8   : > { %v1665_v62 = vadd.f32 %v1658_v59, %v1393_v19 }
 0xdb9   : > { %v2317_v1 = vpop.f32.mrf.mxu0 }
 0xdba   : > { %v1667_v2 = vadd.f32 %v1665_v62, %v2629_v3 }
 0xdbb   : > { %v1661_v5 = vpop.f32.mrf.mxu0 }
 0xdbc   : > { %v2877_v6 = vadd.f32 %v1672_v0, %v1667_v2  ;;  %v1666_v7 = vadd.f32 %v1661_v5, %v2850_v23  ;;  %v2394_v23 = vld [vmem:[%s2613_s13 + $0x8] sm:$0xff]  }
 0xdbd   : > { %v2318_v8 = vpop.f32.mrf.mxu0  ;;  %2320 = vmatpush3.bf16.msra.mxu1 %v2394_v23 }
 0xdbe   : > { %v1668_v9 = vadd.f32 %v1666_v7, %v2631_v4  ;;  %v1675_v10 = vsel %vm453_vm1, %v2877_v6, 0.0  ;;  %2321 = vmatprep.subr.bf16.mxu1 %v2504_v18 }
 0xdbf   : > { %1676 = vadd.xlane.f32.xlu1 %v1675_v10 }
 0xdc0   : > { %v2883_v11 = vadd.f32 %v1672_v0, %v1668_v9 }
 0xdc1   : > { %2322 = vmatpush3.bf16.msra.mxu1 %v2395_v24 }
 0xdc2   : > { %v1678_v12 = vsel %vm453_vm1, %v2883_v11, 0.0 }
 0xdc3   : > { %1679 = vadd.xlane.f32.xlu0 %v1678_v12 }
 0xe48   : > { %v1677_v3 = vpop.xlane.xlu1 %1676 }
 0xe49   : > { %v1681_v14 = vmul.f32 0.03125, %v1677_v3 }
 0xe4b   : > { %v1683_v16 = vsub.f32 %v2877_v6, %v1681_v14  ;;  %v1906_v14 = vsub.s32 5, %v2651_v27 }
 0xe4c   : > { %v1680_v17 = vpop.xlane.xlu0 %1679 }
 0xe4d   : > { %v1682_v61 = vmul.f32 0.03125, %v1680_v17  ;;  %v1685_v19 = vmul.f32 %v1683_v16, %v1683_v16 }
 0xe4f   : > { %v1684_v4 = vsub.f32 %v2883_v11, %v1682_v61  ;;  %v1687_v20 = vsel %vm453_vm1, %v1685_v19, 0.0 }
 0xe50   : > { %1688 = vadd.xlane.f32.xlu0 %v1687_v20 }
 0xe51   : > { %v1686_v21 = vmul.f32 %v1684_v4, %v1684_v4 }
 0xe53   : > { %v1690_v22 = vsel %vm453_vm1, %v1686_v21, 0.0 }
 0xe54   : > { %1691 = vadd.xlane.f32.xlu1 %v1690_v22 }
 0xed9   : > { %v1689_v25 = vpop.xlane.xlu0 %1688 }
 0xeda   : > { %v1693_v26 = vmul.f32 0.03125, %v1689_v25 }
 0xedc   : > { %v1695_v28 = vadd.f32 1e-05, %v1693_v26 }
 0xedd   : > { %v1692_v31 = vpop.xlane.xlu1 %1691 }
 0xede   : > { %2440 = vrsqrt.f32 %v1695_v28  ;;  %v1694_v32 = vmul.f32 0.03125, %v1692_v31 }
 0xee0   : > { %v1696_v56 = vadd.f32 1e-05, %v1694_v32 }
 0xee2   : > { %2442 = vrsqrt.f32 %v1696_v56 }
 0xeeb   : > { %v2441_v33 = vpop.eup %2440 }
 0xeec   : > { %v1699_v60 = vmul.f32 %v2441_v33, %v1683_v16  ;;  %v1907_v16 = vrot.slane %v2654_v29, %v1906_v14 }
 0xeee   : > { %v1705_v36 = vmul.f32 %v1704_v15, %v1699_v60 }
 0xeef   : > { %v2443_v63 = vpop.eup %2442 }
 0xef0   : > { %v1700_v35 = vmul.f32 %v2443_v63, %v1684_v4  ;;  %v1711_v38 = vadd.f32 %v1710_v37, %v1705_v36 }
 0xef2   : > { %v1706_v53 = vmul.f32 %v1704_v15, %v1700_v35 }
 0xef4   : > { %v1712_v39 = vadd.f32 %v1710_v37, %v1706_v53 }
 0xef6   : > { %v1713_v40 = vpack.c.bf16 %v1712_v39, %v1711_v38 }
 0xef8   : > { %2324 = vmatmul.mubr.msk.bf16.vlgmr.msra.gmra.mxu1 %vm453_vm1, %v1713_v40 }
 0xfb8   : > { %v1773_v51 = vpop.f32.mrf.mxu1 }
 0xfb9   : > { %v1774_v52 = vadd.f32 %v1773_v51, %v1723_v50 }
 0xfba   : > { %v2325_v54 = vpop.f32.mrf.mxu1 }
 0xfbb   : > { %v2109_v55 = vmul.f32 -1.702, %v1774_v52 }
 0xfbc   : > { %v1776_v57 = vpop.f32.mrf.mxu1 }
 0xfbd   : > { %v1784_v59 = vmul.f32 1.442695, %v2109_v55  ;;  %v1777_v62 = vadd.f32 %v1776_v57, %v1723_v50 }
 0xfbe   : > { %v2326_v0 = vpop.f32.mrf.mxu1 }
 0xfbf   : > { %2444 = vpow2.f32 %v1784_v59  ;;  %v2110_v18 = vmul.f32 -1.702, %v1777_v62 }
 0xfc1   : > { %v1786_v1 = vmul.f32 1.442695, %v2110_v18 }
 0xfc3   : > { %2446 = vpow2.f32 %v1786_v1 }
 0xfcc   : > { %v2445_v2 = vpop.eup %2444 }
 0xfcd   : > { %v1788_v5 = vadd.f32 1.0, %v2445_v2 }
 0xfcf   : > { %2448 = vrcp.f32 %v1788_v5 }
 0xfd0   : > { %v2447_v7 = vpop.eup %2446 }
 0xfd1   : > { %v1789_v8 = vadd.f32 1.0, %v2447_v7 }
 0xfd3   : > { %2450 = vrcp.f32 %v1789_v8 }
 0xfdc   : > { %v2449_v9 = vpop.eup %2448 }
 0xfdd   : > { %v1794_v10 = vmul.f32 %v2449_v9, %v1774_v52 }
 0xfe0   : > { %v2451_v30 = vpop.eup %2450 }
 0xfe1   : > { %v1795_v12 = vmul.f32 %v2451_v30, %v1777_v62 }
 0xfe3   : > { %v1796_v3 = vpack.c.bf16 %v1795_v12, %v1794_v10 }
 0xfe5   : > { %2344 = vmatmul.mubr.bf16.vlgmr.msra.gmra.mxu0 %v1796_v3 }
0x10a5   : > { %v1895_v17 = vpop.f32.mrf.mxu0 }
0x10a6   : > { %v1902_v61 = vadd.f32 %v1895_v17, %v2877_v6 }
0x10a7   : > { %v2345_v19 = vpop.f32.mrf.mxu0 }
0x10a8   : > { %v1908_v4 = vadd.f32 %v1907_v16, %v1902_v61 }
0x10a9   : > { %v1898_v20 = vpop.f32.mrf.mxu0 }
0x10aa   : > { %1910 = vst.msk [vmem:[#allocation2] sm:$0xff] %vm453_vm1, %v1908_v4  ;;  %v1903_v21 = vadd.f32 %v1898_v20, %v2883_v11  ;;  %1915 = sbr.rel (%p2119_p6) target bundleno = 4274 (0x10b2), region = 60 }
0x10ab   : > { %v2346_v22 = vpop.f32.mrf.mxu0 }
0x10ac   : > { %v1909_v23 = vadd.f32 %v1907_v16, %v1903_v21 }
0x10ae   : > { %1911 = vst.msk [vmem:[#allocation2 + $0x8] sm:$0xff] %vm453_vm1, %v1909_v23 }
0x10af   : > { %v1916_v27 = vpack.c.bf16 %v1908_v4, %v1908_v4  ;;  %vm1918_vm6 = vcmask 257024   ;;  %v1917_v29 = vpack.c.bf16 %v1909_v23, %v1909_v23 }
0x10b1   : > { %1919 = vst.msk [vmem:[#allocation3] sm:$0xf] %vm1918_vm6, %v1916_v27  ;;  %1920 = vst.msk [vmem:[#allocation3 + $0x4] sm:$0xf] %vm1918_vm6, %v1917_v29 }
0x10b2 PF: > { %s2968_s10 = sadd.s32 4294967295, %s2502_s29   ;;  %s2517_s19 = smov [#allocation3]  }
0x10b3   : > { %p2929_p7 = scmp.eq.s32.totalorder %s2968_s10, 1  ;;  %s1930_s22 = sshll.u32 %s2517_s19, 4  ;;  %s1931_s22 = int_to_ptr.vmem [resolvable:$true] %s1930_s22 }
0x10b4   : > { %s2452_s1 = scalar_lea.vmem %s1931_s22, 128  ;;  %p2459_p11 = scmp.lt.s32.totalorder %s1931_s22, %s1931_s22 }
0x10b5   : > { %p2453_p8 = scmp.ne.s32.totalorder %s1931_s22, %s2452_s1  ;;  %p2460_p12 = scmp.lt.s32.totalorder %s2452_s1, %s2452_s1 }
0x10b7   : > { %p2454_p9 = pnand %p2453_p8, %p2929_p7  ;;  %p2461_p13 = por %p2460_p12, %p2459_p11 }
0x10b9   : > { %p2455_p10 = pneg %p2454_p9 }
0x10bb   : > { %p2462_p0 = pnand %p2461_p13, %p2455_p10 }
0x10bd   : > { %2465 = shalt.err (!%p2462_p0)
}
0x10be   : > { %s2518_s27 = smov 4  }
0x10bf   : > { %2348 = dma.vmem_to_hbm [thread:$0]  (%p2929_p7), %s1931_s22, 128, %s2963_s8, [#allocation4], %s2507_s15, %s2507_s15, %s2518_s27  }
0x10c0   : > { %2489 = dma.done.wait (%p2929_p7), [#allocation4], 128  }
0x10c1   : > { %2491 = vsyncadd (%p2929_p7), [#allocation4], 4294967168 }
0x10c2 PF: > { %s19_s29 = sadd.s32 1, %s2502_s29   ;;  %s2970_s27 = smov %s2498_s28 }
0x10c3   : > { %p16_p1 = scmp.ge.s32.totalorder %s19_s29, 4   ;;  %s2971_s28 = smov %s2973_s9 }
0x10c5   :  { %18 = sbr.rel (!%p16_p1) target bundleno = 4 (0x4), region = 109 }
0x10ca   :  { %1946 = vsyncpa [#allocation4], 1 }
0x10cb   :  { %1948 = vsyncpa [#allocation4 + $0x1], 1 }

</bundles_post_ra>
